<compile_context>
chip_gen: v6e
topology: v6e:2x2x1
jax: 0.10.0
libtpu: 0.0.40
codegen_flags: <defaults>
</compile_context>

<pallas_src>
import math
import functools

import jax
import jax.numpy as jnp
from jax import lax
from jax.experimental import pallas as pl
from jax.experimental.pallas import tpu as pltpu


def _ntxent_r2d2_kernel(z_ref, out_ref, *, n_way, inv_sqrt_tau, reg):
    # z block is (1, n, d); squeeze the episode dim. Keep math in f32 (safe on v5e VPU/EUP).
    z = z_ref[0].astype(jnp.float32)                                    # (n, d)

    # F.normalize(z, p=2, dim=1) / sqrt(tau): single EUP rsqrt + VPU mul.
    # Clamp on sum-of-squares at 1e-24 == torch's eps=1e-12 clamp on the norm.
    sumsq = jnp.sum(z * z, axis=1, keepdims=True)                       # (n, 1)
    zn = z * (lax.rsqrt(jnp.maximum(sumsq, 1e-24)) * inv_sqrt_tau)      # (n, d)

    s = zn[:n_way, :]                                                   # support (n_way, d)

    # One MXU push gives both the support Gram matrix and query-support similarities:
    #   zn @ s^T = [[ S S^T ], [ Q S^T ]]
    zst = lax.dot_general(zn, s, (((1,), (1,)), ((), ())),
                          preferred_element_type=jnp.float32)           # (n, n_way)

    ridx1 = lax.broadcasted_iota(jnp.int32, (n_way, 1), 0)              # row indices
    cidx1 = lax.broadcasted_iota(jnp.int32, (1, n_way), 1)              # col indices
    eye = (ridx1 == cidx1).astype(jnp.float32)                          # (n_way, n_way)

    G = zst[:n_way, :] + reg * eye                                      # S S^T + reg*I
    qs = zst[n_way:, :]                                                 # Q S^T

    # Invert G with an unrolled, mask-based Gauss-Jordan (no pivoting needed: G is SPD
    # and strictly diagonally dominant since reg > 0 and rows of S have norm 1/sqrt(tau)).
    A = G
    B = eye
    for k in range(n_way):                                              # n_way static & tiny
        krow = ridx1 == k                                               # (n_way, 1)
        kcol = cidx1 == k                                               # (1, n_way)
        pivot = jnp.sum(jnp.where(krow & kcol, A, 0.0), keepdims=True)  # (1, 1)
        inv_p = 1.0 / pivot
        a_row = jnp.sum(jnp.where(krow, A, 0.0), axis=0, keepdims=True) * inv_p  # (1, n_way)
        b_row = jnp.sum(jnp.where(krow, B, 0.0), axis=0, keepdims=True) * inv_p  # (1, n_way)
        a_col = jnp.sum(jnp.where(kcol, A, 0.0), axis=1, keepdims=True)          # (n_way, 1)
        A = jnp.where(krow, a_row, A - a_col * a_row)
        B = jnp.where(krow, b_row, B - a_col * b_row)
    g_inv = B                                                           # (n_way, n_way)

    # logits = Q S^T (S S^T + reg*I)^{-1}   (label one-hot == identity, so no extra matmul)
    logits = jnp.dot(qs, g_inv, preferred_element_type=jnp.float32)     # (n_way, n_way)

    # Cross-entropy with targets arange(n_way) (query i belongs to class i).
    row_max = jnp.max(logits, axis=1, keepdims=True)
    lse = row_max + jnp.log(jnp.sum(jnp.exp(logits - row_max), axis=1, keepdims=True))
    diag = jnp.sum(logits * eye, axis=1, keepdims=True)
    loss = jnp.sum(lse - diag, keepdims=True) * (1.0 / n_way)           # (1, 1)

    # Accuracy: first-index argmax tie-break (matches torch.argmax).
    is_max = logits >= row_max
    pred = jnp.min(jnp.where(is_max, cidx1, n_way), axis=1, keepdims=True)   # (n_way, 1)
    acc = jnp.sum((pred == ridx1).astype(jnp.float32), keepdims=True) * (1.0 / n_way)

    # Fused epilogue store: lane 0 = loss, lane 1 = acc.
    lane = lax.broadcasted_iota(jnp.int32, (1, 2), 1)
    out_ref[0] = jnp.where(lane == 0, loss, acc)


def ntxent_r2d2_batched(zs, tau=1.0, reg=50.0, multiplier=2):
    """Batched forward over E independent episodes. zs: (E, n, d). Returns (loss[E], acc[E])."""
    E, n, d = zs.shape
    assert n % multiplier == 0
    n_way = n // multiplier
    kernel = functools.partial(
        _ntxent_r2d2_kernel, n_way=n_way,
        inv_sqrt_tau=1.0 / math.sqrt(tau), reg=float(reg))

    out = pl.pallas_call(
        kernel,
        out_shape=jax.ShapeDtypeStruct((E, 1, 2), jnp.float32),
        grid=(E,),
        in_specs=[pl.BlockSpec((1, n, d), lambda e: (e, 0, 0))],
        out_specs=pl.BlockSpec((1, 1, 2), lambda e: (e, 0, 0)),
        compiler_params=pltpu.CompilerParams(
            dimension_semantics=("parallel",)),   # shards episodes across TCs on v7x
    )(zs)
    return out[:, 0, 0], out[:, 0, 1]


def ntxent_r2d2(z, tau=1.0, reg=50.0, multiplier=2):
    """Single-episode forward, matching NTXent_R2D2.forward(z) -> (loss, acc)."""
    loss, acc = ntxent_r2d2_batched(z[None], tau=tau, reg=reg, multiplier=multiplier)
    return loss[0], acc[0]


def ntxent_r2d2_ref(z, tau=1.0, reg=50.0, multiplier=2):
    """Pure-JAX reference for verification."""
    n, d = z.shape
    n_way = n // multiplier
    norm = jnp.sqrt(jnp.sum(z * z, axis=1, keepdims=True))
    zn = z / jnp.maximum(norm, 1e-12) / math.sqrt(tau)
    s, q = zn[:n_way], zn[n_way:]
    G = s @ s.T + reg * jnp.eye(n_way, dtype=zn.dtype)
    logits = q @ s.T @ jnp.linalg.inv(G)          # one_hot(arange(n_way)) == identity
    labels = jnp.arange(n_way)
    logp = jax.nn.log_softmax(logits, axis=1)
    loss = -jnp.mean(logp[labels, labels])
    acc = jnp.mean((jnp.argmax(logits, axis=1) == labels).astype(jnp.float32))
    return loss, acc


if __name__ == "__main__":
    key = jax.random.PRNGKey(0)
    E, n, d = 4, 16, 32          # 4 episodes; n=16 -> n_way=8 (multiplier=2), embedding d=32
    zs = jax.random.normal(key, (E, n, d), dtype=jnp.float32)

    # Batched (grid over episodes) kernel call.
    loss_b, acc_b = ntxent_r2d2_batched(zs)
    jax.block_until_ready((loss_b, acc_b))

    # Single-episode call (module-equivalent signature).
    loss0, acc0 = ntxent_r2d2(zs[0])
    jax.block_until_ready((loss0, acc0))

    # Verify against the pure-JAX reference.
    for e in range(E):
        lr, ar = ntxent_r2d2_ref(zs[e])
        assert jnp.allclose(loss_b[e], lr, rtol=1e-3, atol=1e-3), (e, loss_b[e], lr)
        assert jnp.allclose(acc_b[e], ar, rtol=1e-3, atol=1e-3), (e, acc_b[e], ar)
    lr0, ar0 = ntxent_r2d2_ref(zs[0])
    assert jnp.allclose(loss0, lr0, rtol=1e-3, atol=1e-3), (loss0, lr0)
    assert jnp.allclose(acc0, ar0, rtol=1e-3, atol=1e-3), (acc0, ar0)

    print("KERNEL_OK")
</pallas_src>

<mosaic_0001>
module attributes {stable_mosaic.version = 11 : i64} {
  func.func @_ntxent_r2d2_kernel(%arg0: i32, %arg1: memref<1x16x32xf32, #tpu.memory_space<vmem>>, %arg2: memref<1x1x2xf32, #tpu.memory_space<vmem>>) attributes {dimension_semantics = [#tpu.dimension_semantics<parallel>], iteration_bounds = array<i64: 4>, scalar_prefetch = 0 : i64, scratch_operands = 0 : i64, tpu.core_type = #tpu.core_type<tc>, window_params = [{transform_indices = @transform_0, window_bounds = array<i64: 1, 16, 32>}, {transform_indices = @transform_1, window_bounds = array<i64: 1, 1, 2>}]} {
    %c0 = arith.constant 0 : index
    %c0_0 = arith.constant 0 : index
    %c0_1 = arith.constant 0 : index
    %0 = vector.load %arg1[%c0, %c0_0, %c0_1] : memref<1x16x32xf32, #tpu.memory_space<vmem>>, vector<1x16x32xf32>
    %1 = vector.shape_cast %0 : vector<1x16x32xf32> to vector<16x32xf32>
    %2 = arith.mulf %1, %1 : vector<16x32xf32>
    %cst = arith.constant dense<0.000000e+00> : vector<16xf32>
    %3 = vector.multi_reduction <add>, %2, %cst [1] : vector<16x32xf32> to vector<16xf32>
    %4 = vector.shape_cast %3 : vector<16xf32> to vector<16x1xf32>
    %cst_2 = arith.constant 1.000000e-24 : f32
    %5 = vector.broadcast %cst_2 : f32 to vector<16x1xf32>
    %6 = arith.maximumf %4, %5 : vector<16x1xf32>
    %7 = math.rsqrt %6 : vector<16x1xf32>
    %cst_3 = arith.constant 1.000000e+00 : f32
    %8 = vector.broadcast %cst_3 : f32 to vector<16x1xf32>
    %9 = arith.mulf %7, %8 : vector<16x1xf32>
    %10 = vector.broadcast %9 : vector<16x1xf32> to vector<16x32xf32>
    %11 = arith.mulf %1, %10 : vector<16x32xf32>
    %12 = vector.extract_strided_slice %11 {offsets = [0, 0], sizes = [8, 32], strides = [1, 1]} : vector<16x32xf32> to vector<8x32xf32>
    %cst_4 = arith.constant dense<0.000000e+00> : vector<16x8xf32>
    %13 = tpu.matmul %11, %12, %cst_4 {dimension_numbers = #tpu.dot_dimension_numbers<[1], [1], [0], [0], [0, 0, 1, 0], [], []>} : vector<16x32xf32>, vector<8x32xf32>, vector<16x8xf32> -> vector<16x8xf32>
    %14 = tpu.iota {dimensions = array<i32: 0>} : vector<8x1xi32>
    %15 = tpu.iota {dimensions = array<i32: 1>} : vector<1x8xi32>
    %16 = vector.broadcast %14 : vector<8x1xi32> to vector<8x8xi32>
    %17 = vector.broadcast %15 : vector<1x8xi32> to vector<8x8xi32>
    %18 = arith.cmpi eq, %16, %17 : vector<8x8xi32>
    %19 = arith.extui %18 : vector<8x8xi1> to vector<8x8xi32>
    %20 = arith.sitofp %19 : vector<8x8xi32> to vector<8x8xf32>
    %21 = vector.extract_strided_slice %13 {offsets = [0, 0], sizes = [8, 8], strides = [1, 1]} : vector<16x8xf32> to vector<8x8xf32>
    %cst_5 = arith.constant 5.000000e+01 : f32
    %22 = vector.broadcast %cst_5 : f32 to vector<8x8xf32>
    %23 = arith.mulf %22, %20 : vector<8x8xf32>
    %24 = arith.addf %21, %23 : vector<8x8xf32>
    %25 = vector.extract_strided_slice %13 {offsets = [8, 0], sizes = [8, 8], strides = [1, 1]} : vector<16x8xf32> to vector<8x8xf32>
    %c0_i32 = arith.constant 0 : i32
    %26 = vector.broadcast %c0_i32 : i32 to vector<8x1xi32>
    %27 = arith.cmpi eq, %14, %26 : vector<8x1xi32>
    %c0_i32_6 = arith.constant 0 : i32
    %28 = vector.broadcast %c0_i32_6 : i32 to vector<1x8xi32>
    %29 = arith.cmpi eq, %15, %28 : vector<1x8xi32>
    %30 = vector.broadcast %27 : vector<8x1xi1> to vector<8x8xi1>
    %31 = vector.broadcast %29 : vector<1x8xi1> to vector<8x8xi1>
    %32 = arith.andi %30, %31 : vector<8x8xi1>
    %cst_7 = arith.constant 0.000000e+00 : f32
    %33 = vector.broadcast %cst_7 : f32 to vector<8x8xf32>
    %34 = arith.select %32, %24, %33 : vector<8x8xi1>, vector<8x8xf32>
    %35 = vector.shape_cast %34 : vector<8x8xf32> to vector<1x8x8xf32>
    %cst_8 = arith.constant dense<0.000000e+00> : vector<1xf32>
    %36 = vector.multi_reduction <add>, %35, %cst_8 [1, 2] : vector<1x8x8xf32> to vector<1xf32>
    %37 = vector.shape_cast %36 : vector<1xf32> to vector<1x1x1xf32>
    %38 = vector.extract %37[0, 0, 0] : f32 from vector<1x1x1xf32>
    %39 = vector.broadcast %38 : f32 to vector<1x1xf32>
    %cst_9 = arith.constant 1.000000e+00 : f32
    %40 = vector.broadcast %cst_9 : f32 to vector<1x1xf32>
    %41 = arith.divf %40, %39 : vector<1x1xf32>
    %cst_10 = arith.constant 0.000000e+00 : f32
    %42 = vector.shape_cast %27 : vector<8x1xi1> to vector<8x1xi1>
    %43 = vector.broadcast %42 : vector<8x1xi1> to vector<8x8xi1>
    %44 = vector.broadcast %cst_10 : f32 to vector<8x8xf32>
    %45 = arith.select %43, %24, %44 : vector<8x8xi1>, vector<8x8xf32>
    %cst_11 = arith.constant dense<0.000000e+00> : vector<8xf32>
    %46 = vector.multi_reduction <add>, %45, %cst_11 [0] : vector<8x8xf32> to vector<8xf32>
    %47 = vector.shape_cast %46 : vector<8xf32> to vector<1x8xf32>
    %48 = vector.broadcast %41 : vector<1x1xf32> to vector<1x8xf32>
    %49 = arith.mulf %47, %48 : vector<1x8xf32>
    %cst_12 = arith.constant 0.000000e+00 : f32
    %50 = vector.shape_cast %27 : vector<8x1xi1> to vector<8x1xi1>
    %51 = vector.broadcast %50 : vector<8x1xi1> to vector<8x8xi1>
    %52 = vector.broadcast %cst_12 : f32 to vector<8x8xf32>
    %53 = arith.select %51, %20, %52 : vector<8x8xi1>, vector<8x8xf32>
    %cst_13 = arith.constant dense<0.000000e+00> : vector<8xf32>
    %54 = vector.multi_reduction <add>, %53, %cst_13 [0] : vector<8x8xf32> to vector<8xf32>
    %55 = vector.shape_cast %54 : vector<8xf32> to vector<1x8xf32>
    %56 = vector.broadcast %41 : vector<1x1xf32> to vector<1x8xf32>
    %57 = arith.mulf %55, %56 : vector<1x8xf32>
    %cst_14 = arith.constant 0.000000e+00 : f32
    %58 = vector.shape_cast %29 : vector<1x8xi1> to vector<1x8xi1>
    %59 = vector.broadcast %58 : vector<1x8xi1> to vector<8x8xi1>
    %60 = vector.broadcast %cst_14 : f32 to vector<8x8xf32>
    %61 = arith.select %59, %24, %60 : vector<8x8xi1>, vector<8x8xf32>
    %cst_15 = arith.constant dense<0.000000e+00> : vector<8xf32>
    %62 = vector.multi_reduction <add>, %61, %cst_15 [1] : vector<8x8xf32> to vector<8xf32>
    %63 = vector.shape_cast %62 : vector<8xf32> to vector<8x1xf32>
    %64 = vector.broadcast %63 : vector<8x1xf32> to vector<8x8xf32>
    %65 = vector.broadcast %49 : vector<1x8xf32> to vector<8x8xf32>
    %66 = arith.mulf %64, %65 : vector<8x8xf32>
    %67 = arith.subf %24, %66 : vector<8x8xf32>
    %68 = vector.shape_cast %27 : vector<8x1xi1> to vector<8x1xi1>
    %69 = vector.broadcast %68 : vector<8x1xi1> to vector<8x8xi1>
    %70 = vector.shape_cast %49 : vector<1x8xf32> to vector<1x8xf32>
    %71 = vector.broadcast %70 : vector<1x8xf32> to vector<8x8xf32>
    %72 = arith.select %69, %71, %67 : vector<8x8xi1>, vector<8x8xf32>
    %73 = vector.broadcast %63 : vector<8x1xf32> to vector<8x8xf32>
    %74 = vector.broadcast %57 : vector<1x8xf32> to vector<8x8xf32>
    %75 = arith.mulf %73, %74 : vector<8x8xf32>
    %76 = arith.subf %20, %75 : vector<8x8xf32>
    %77 = vector.shape_cast %27 : vector<8x1xi1> to vector<8x1xi1>
    %78 = vector.broadcast %77 : vector<8x1xi1> to vector<8x8xi1>
    %79 = vector.shape_cast %57 : vector<1x8xf32> to vector<1x8xf32>
    %80 = vector.broadcast %79 : vector<1x8xf32> to vector<8x8xf32>
    %81 = arith.select %78, %80, %76 : vector<8x8xi1>, vector<8x8xf32>
    %c1_i32 = arith.constant 1 : i32
    %82 = vector.broadcast %c1_i32 : i32 to vector<8x1xi32>
    %83 = arith.cmpi eq, %14, %82 : vector<8x1xi32>
    %c1_i32_16 = arith.constant 1 : i32
    %84 = vector.broadcast %c1_i32_16 : i32 to vector<1x8xi32>
    %85 = arith.cmpi eq, %15, %84 : vector<1x8xi32>
    %86 = vector.broadcast %83 : vector<8x1xi1> to vector<8x8xi1>
    %87 = vector.broadcast %85 : vector<1x8xi1> to vector<8x8xi1>
    %88 = arith.andi %86, %87 : vector<8x8xi1>
    %cst_17 = arith.constant 0.000000e+00 : f32
    %89 = vector.broadcast %cst_17 : f32 to vector<8x8xf32>
    %90 = arith.select %88, %72, %89 : vector<8x8xi1>, vector<8x8xf32>
    %91 = vector.shape_cast %90 : vector<8x8xf32> to vector<1x8x8xf32>
    %cst_18 = arith.constant dense<0.000000e+00> : vector<1xf32>
    %92 = vector.multi_reduction <add>, %91, %cst_18 [1, 2] : vector<1x8x8xf32> to vector<1xf32>
    %93 = vector.shape_cast %92 : vector<1xf32> to vector<1x1x1xf32>
    %94 = vector.extract %93[0, 0, 0] : f32 from vector<1x1x1xf32>
    %95 = vector.broadcast %94 : f32 to vector<1x1xf32>
    %cst_19 = arith.constant 1.000000e+00 : f32
    %96 = vector.broadcast %cst_19 : f32 to vector<1x1xf32>
    %97 = arith.divf %96, %95 : vector<1x1xf32>
    %cst_20 = arith.constant 0.000000e+00 : f32
    %98 = vector.shape_cast %83 : vector<8x1xi1> to vector<8x1xi1>
    %99 = vector.broadcast %98 : vector<8x1xi1> to vector<8x8xi1>
    %100 = vector.broadcast %cst_20 : f32 to vector<8x8xf32>
    %101 = arith.select %99, %72, %100 : vector<8x8xi1>, vector<8x8xf32>
    %cst_21 = arith.constant dense<0.000000e+00> : vector<8xf32>
    %102 = vector.multi_reduction <add>, %101, %cst_21 [0] : vector<8x8xf32> to vector<8xf32>
    %103 = vector.shape_cast %102 : vector<8xf32> to vector<1x8xf32>
    %104 = vector.broadcast %97 : vector<1x1xf32> to vector<1x8xf32>
    %105 = arith.mulf %103, %104 : vector<1x8xf32>
    %cst_22 = arith.constant 0.000000e+00 : f32
    %106 = vector.shape_cast %83 : vector<8x1xi1> to vector<8x1xi1>
    %107 = vector.broadcast %106 : vector<8x1xi1> to vector<8x8xi1>
    %108 = vector.broadcast %cst_22 : f32 to vector<8x8xf32>
    %109 = arith.select %107, %81, %108 : vector<8x8xi1>, vector<8x8xf32>
    %cst_23 = arith.constant dense<0.000000e+00> : vector<8xf32>
    %110 = vector.multi_reduction <add>, %109, %cst_23 [0] : vector<8x8xf32> to vector<8xf32>
    %111 = vector.shape_cast %110 : vector<8xf32> to vector<1x8xf32>
    %112 = vector.broadcast %97 : vector<1x1xf32> to vector<1x8xf32>
    %113 = arith.mulf %111, %112 : vector<1x8xf32>
    %cst_24 = arith.constant 0.000000e+00 : f32
    %114 = vector.shape_cast %85 : vector<1x8xi1> to vector<1x8xi1>
    %115 = vector.broadcast %114 : vector<1x8xi1> to vector<8x8xi1>
    %116 = vector.broadcast %cst_24 : f32 to vector<8x8xf32>
    %117 = arith.select %115, %72, %116 : vector<8x8xi1>, vector<8x8xf32>
    %cst_25 = arith.constant dense<0.000000e+00> : vector<8xf32>
    %118 = vector.multi_reduction <add>, %117, %cst_25 [1] : vector<8x8xf32> to vector<8xf32>
    %119 = vector.shape_cast %118 : vector<8xf32> to vector<8x1xf32>
    %120 = vector.broadcast %119 : vector<8x1xf32> to vector<8x8xf32>
    %121 = vector.broadcast %105 : vector<1x8xf32> to vector<8x8xf32>
    %122 = arith.mulf %120, %121 : vector<8x8xf32>
    %123 = arith.subf %72, %122 : vector<8x8xf32>
    %124 = vector.shape_cast %83 : vector<8x1xi1> to vector<8x1xi1>
    %125 = vector.broadcast %124 : vector<8x1xi1> to vector<8x8xi1>
    %126 = vector.shape_cast %105 : vector<1x8xf32> to vector<1x8xf32>
    %127 = vector.broadcast %126 : vector<1x8xf32> to vector<8x8xf32>
    %128 = arith.select %125, %127, %123 : vector<8x8xi1>, vector<8x8xf32>
    %129 = vector.broadcast %119 : vector<8x1xf32> to vector<8x8xf32>
    %130 = vector.broadcast %113 : vector<1x8xf32> to vector<8x8xf32>
    %131 = arith.mulf %129, %130 : vector<8x8xf32>
    %132 = arith.subf %81, %131 : vector<8x8xf32>
    %133 = vector.shape_cast %83 : vector<8x1xi1> to vector<8x1xi1>
    %134 = vector.broadcast %133 : vector<8x1xi1> to vector<8x8xi1>
    %135 = vector.shape_cast %113 : vector<1x8xf32> to vector<1x8xf32>
    %136 = vector.broadcast %135 : vector<1x8xf32> to vector<8x8xf32>
    %137 = arith.select %134, %136, %132 : vector<8x8xi1>, vector<8x8xf32>
    %c2_i32 = arith.constant 2 : i32
    %138 = vector.broadcast %c2_i32 : i32 to vector<8x1xi32>
    %139 = arith.cmpi eq, %14, %138 : vector<8x1xi32>
    %c2_i32_26 = arith.constant 2 : i32
    %140 = vector.broadcast %c2_i32_26 : i32 to vector<1x8xi32>
    %141 = arith.cmpi eq, %15, %140 : vector<1x8xi32>
    %142 = vector.broadcast %139 : vector<8x1xi1> to vector<8x8xi1>
    %143 = vector.broadcast %141 : vector<1x8xi1> to vector<8x8xi1>
    %144 = arith.andi %142, %143 : vector<8x8xi1>
    %cst_27 = arith.constant 0.000000e+00 : f32
    %145 = vector.broadcast %cst_27 : f32 to vector<8x8xf32>
    %146 = arith.select %144, %128, %145 : vector<8x8xi1>, vector<8x8xf32>
    %147 = vector.shape_cast %146 : vector<8x8xf32> to vector<1x8x8xf32>
    %cst_28 = arith.constant dense<0.000000e+00> : vector<1xf32>
    %148 = vector.multi_reduction <add>, %147, %cst_28 [1, 2] : vector<1x8x8xf32> to vector<1xf32>
    %149 = vector.shape_cast %148 : vector<1xf32> to vector<1x1x1xf32>
    %150 = vector.extract %149[0, 0, 0] : f32 from vector<1x1x1xf32>
    %151 = vector.broadcast %150 : f32 to vector<1x1xf32>
    %cst_29 = arith.constant 1.000000e+00 : f32
    %152 = vector.broadcast %cst_29 : f32 to vector<1x1xf32>
    %153 = arith.divf %152, %151 : vector<1x1xf32>
    %cst_30 = arith.constant 0.000000e+00 : f32
    %154 = vector.shape_cast %139 : vector<8x1xi1> to vector<8x1xi1>
    %155 = vector.broadcast %154 : vector<8x1xi1> to vector<8x8xi1>
    %156 = vector.broadcast %cst_30 : f32 to vector<8x8xf32>
    %157 = arith.select %155, %128, %156 : vector<8x8xi1>, vector<8x8xf32>
    %cst_31 = arith.constant dense<0.000000e+00> : vector<8xf32>
    %158 = vector.multi_reduction <add>, %157, %cst_31 [0] : vector<8x8xf32> to vector<8xf32>
    %159 = vector.shape_cast %158 : vector<8xf32> to vector<1x8xf32>
    %160 = vector.broadcast %153 : vector<1x1xf32> to vector<1x8xf32>
    %161 = arith.mulf %159, %160 : vector<1x8xf32>
    %cst_32 = arith.constant 0.000000e+00 : f32
    %162 = vector.shape_cast %139 : vector<8x1xi1> to vector<8x1xi1>
    %163 = vector.broadcast %162 : vector<8x1xi1> to vector<8x8xi1>
    %164 = vector.broadcast %cst_32 : f32 to vector<8x8xf32>
    %165 = arith.select %163, %137, %164 : vector<8x8xi1>, vector<8x8xf32>
    %cst_33 = arith.constant dense<0.000000e+00> : vector<8xf32>
    %166 = vector.multi_reduction <add>, %165, %cst_33 [0] : vector<8x8xf32> to vector<8xf32>
    %167 = vector.shape_cast %166 : vector<8xf32> to vector<1x8xf32>
    %168 = vector.broadcast %153 : vector<1x1xf32> to vector<1x8xf32>
    %169 = arith.mulf %167, %168 : vector<1x8xf32>
    %cst_34 = arith.constant 0.000000e+00 : f32
    %170 = vector.shape_cast %141 : vector<1x8xi1> to vector<1x8xi1>
    %171 = vector.broadcast %170 : vector<1x8xi1> to vector<8x8xi1>
    %172 = vector.broadcast %cst_34 : f32 to vector<8x8xf32>
    %173 = arith.select %171, %128, %172 : vector<8x8xi1>, vector<8x8xf32>
    %cst_35 = arith.constant dense<0.000000e+00> : vector<8xf32>
    %174 = vector.multi_reduction <add>, %173, %cst_35 [1] : vector<8x8xf32> to vector<8xf32>
    %175 = vector.shape_cast %174 : vector<8xf32> to vector<8x1xf32>
    %176 = vector.broadcast %175 : vector<8x1xf32> to vector<8x8xf32>
    %177 = vector.broadcast %161 : vector<1x8xf32> to vector<8x8xf32>
    %178 = arith.mulf %176, %177 : vector<8x8xf32>
    %179 = arith.subf %128, %178 : vector<8x8xf32>
    %180 = vector.shape_cast %139 : vector<8x1xi1> to vector<8x1xi1>
    %181 = vector.broadcast %180 : vector<8x1xi1> to vector<8x8xi1>
    %182 = vector.shape_cast %161 : vector<1x8xf32> to vector<1x8xf32>
    %183 = vector.broadcast %182 : vector<1x8xf32> to vector<8x8xf32>
    %184 = arith.select %181, %183, %179 : vector<8x8xi1>, vector<8x8xf32>
    %185 = vector.broadcast %175 : vector<8x1xf32> to vector<8x8xf32>
    %186 = vector.broadcast %169 : vector<1x8xf32> to vector<8x8xf32>
    %187 = arith.mulf %185, %186 : vector<8x8xf32>
    %188 = arith.subf %137, %187 : vector<8x8xf32>
    %189 = vector.shape_cast %139 : vector<8x1xi1> to vector<8x1xi1>
    %190 = vector.broadcast %189 : vector<8x1xi1> to vector<8x8xi1>
    %191 = vector.shape_cast %169 : vector<1x8xf32> to vector<1x8xf32>
    %192 = vector.broadcast %191 : vector<1x8xf32> to vector<8x8xf32>
    %193 = arith.select %190, %192, %188 : vector<8x8xi1>, vector<8x8xf32>
    %c3_i32 = arith.constant 3 : i32
    %194 = vector.broadcast %c3_i32 : i32 to vector<8x1xi32>
    %195 = arith.cmpi eq, %14, %194 : vector<8x1xi32>
    %c3_i32_36 = arith.constant 3 : i32
    %196 = vector.broadcast %c3_i32_36 : i32 to vector<1x8xi32>
    %197 = arith.cmpi eq, %15, %196 : vector<1x8xi32>
    %198 = vector.broadcast %195 : vector<8x1xi1> to vector<8x8xi1>
    %199 = vector.broadcast %197 : vector<1x8xi1> to vector<8x8xi1>
    %200 = arith.andi %198, %199 : vector<8x8xi1>
    %cst_37 = arith.constant 0.000000e+00 : f32
    %201 = vector.broadcast %cst_37 : f32 to vector<8x8xf32>
    %202 = arith.select %200, %184, %201 : vector<8x8xi1>, vector<8x8xf32>
    %203 = vector.shape_cast %202 : vector<8x8xf32> to vector<1x8x8xf32>
    %cst_38 = arith.constant dense<0.000000e+00> : vector<1xf32>
    %204 = vector.multi_reduction <add>, %203, %cst_38 [1, 2] : vector<1x8x8xf32> to vector<1xf32>
    %205 = vector.shape_cast %204 : vector<1xf32> to vector<1x1x1xf32>
    %206 = vector.extract %205[0, 0, 0] : f32 from vector<1x1x1xf32>
    %207 = vector.broadcast %206 : f32 to vector<1x1xf32>
    %cst_39 = arith.constant 1.000000e+00 : f32
    %208 = vector.broadcast %cst_39 : f32 to vector<1x1xf32>
    %209 = arith.divf %208, %207 : vector<1x1xf32>
    %cst_40 = arith.constant 0.000000e+00 : f32
    %210 = vector.shape_cast %195 : vector<8x1xi1> to vector<8x1xi1>
    %211 = vector.broadcast %210 : vector<8x1xi1> to vector<8x8xi1>
    %212 = vector.broadcast %cst_40 : f32 to vector<8x8xf32>
    %213 = arith.select %211, %184, %212 : vector<8x8xi1>, vector<8x8xf32>
    %cst_41 = arith.constant dense<0.000000e+00> : vector<8xf32>
    %214 = vector.multi_reduction <add>, %213, %cst_41 [0] : vector<8x8xf32> to vector<8xf32>
    %215 = vector.shape_cast %214 : vector<8xf32> to vector<1x8xf32>
    %216 = vector.broadcast %209 : vector<1x1xf32> to vector<1x8xf32>
    %217 = arith.mulf %215, %216 : vector<1x8xf32>
    %cst_42 = arith.constant 0.000000e+00 : f32
    %218 = vector.shape_cast %195 : vector<8x1xi1> to vector<8x1xi1>
    %219 = vector.broadcast %218 : vector<8x1xi1> to vector<8x8xi1>
    %220 = vector.broadcast %cst_42 : f32 to vector<8x8xf32>
    %221 = arith.select %219, %193, %220 : vector<8x8xi1>, vector<8x8xf32>
    %cst_43 = arith.constant dense<0.000000e+00> : vector<8xf32>
    %222 = vector.multi_reduction <add>, %221, %cst_43 [0] : vector<8x8xf32> to vector<8xf32>
    %223 = vector.shape_cast %222 : vector<8xf32> to vector<1x8xf32>
    %224 = vector.broadcast %209 : vector<1x1xf32> to vector<1x8xf32>
    %225 = arith.mulf %223, %224 : vector<1x8xf32>
    %cst_44 = arith.constant 0.000000e+00 : f32
    %226 = vector.shape_cast %197 : vector<1x8xi1> to vector<1x8xi1>
    %227 = vector.broadcast %226 : vector<1x8xi1> to vector<8x8xi1>
    %228 = vector.broadcast %cst_44 : f32 to vector<8x8xf32>
    %229 = arith.select %227, %184, %228 : vector<8x8xi1>, vector<8x8xf32>
    %cst_45 = arith.constant dense<0.000000e+00> : vector<8xf32>
    %230 = vector.multi_reduction <add>, %229, %cst_45 [1] : vector<8x8xf32> to vector<8xf32>
    %231 = vector.shape_cast %230 : vector<8xf32> to vector<8x1xf32>
    %232 = vector.broadcast %231 : vector<8x1xf32> to vector<8x8xf32>
    %233 = vector.broadcast %217 : vector<1x8xf32> to vector<8x8xf32>
    %234 = arith.mulf %232, %233 : vector<8x8xf32>
    %235 = arith.subf %184, %234 : vector<8x8xf32>
    %236 = vector.shape_cast %195 : vector<8x1xi1> to vector<8x1xi1>
    %237 = vector.broadcast %236 : vector<8x1xi1> to vector<8x8xi1>
    %238 = vector.shape_cast %217 : vector<1x8xf32> to vector<1x8xf32>
    %239 = vector.broadcast %238 : vector<1x8xf32> to vector<8x8xf32>
    %240 = arith.select %237, %239, %235 : vector<8x8xi1>, vector<8x8xf32>
    %241 = vector.broadcast %231 : vector<8x1xf32> to vector<8x8xf32>
    %242 = vector.broadcast %225 : vector<1x8xf32> to vector<8x8xf32>
    %243 = arith.mulf %241, %242 : vector<8x8xf32>
    %244 = arith.subf %193, %243 : vector<8x8xf32>
    %245 = vector.shape_cast %195 : vector<8x1xi1> to vector<8x1xi1>
    %246 = vector.broadcast %245 : vector<8x1xi1> to vector<8x8xi1>
    %247 = vector.shape_cast %225 : vector<1x8xf32> to vector<1x8xf32>
    %248 = vector.broadcast %247 : vector<1x8xf32> to vector<8x8xf32>
    %249 = arith.select %246, %248, %244 : vector<8x8xi1>, vector<8x8xf32>
    %c4_i32 = arith.constant 4 : i32
    %250 = vector.broadcast %c4_i32 : i32 to vector<8x1xi32>
    %251 = arith.cmpi eq, %14, %250 : vector<8x1xi32>
    %c4_i32_46 = arith.constant 4 : i32
    %252 = vector.broadcast %c4_i32_46 : i32 to vector<1x8xi32>
    %253 = arith.cmpi eq, %15, %252 : vector<1x8xi32>
    %254 = vector.broadcast %251 : vector<8x1xi1> to vector<8x8xi1>
    %255 = vector.broadcast %253 : vector<1x8xi1> to vector<8x8xi1>
    %256 = arith.andi %254, %255 : vector<8x8xi1>
    %cst_47 = arith.constant 0.000000e+00 : f32
    %257 = vector.broadcast %cst_47 : f32 to vector<8x8xf32>
    %258 = arith.select %256, %240, %257 : vector<8x8xi1>, vector<8x8xf32>
    %259 = vector.shape_cast %258 : vector<8x8xf32> to vector<1x8x8xf32>
    %cst_48 = arith.constant dense<0.000000e+00> : vector<1xf32>
    %260 = vector.multi_reduction <add>, %259, %cst_48 [1, 2] : vector<1x8x8xf32> to vector<1xf32>
    %261 = vector.shape_cast %260 : vector<1xf32> to vector<1x1x1xf32>
    %262 = vector.extract %261[0, 0, 0] : f32 from vector<1x1x1xf32>
    %263 = vector.broadcast %262 : f32 to vector<1x1xf32>
    %cst_49 = arith.constant 1.000000e+00 : f32
    %264 = vector.broadcast %cst_49 : f32 to vector<1x1xf32>
    %265 = arith.divf %264, %263 : vector<1x1xf32>
    %cst_50 = arith.constant 0.000000e+00 : f32
    %266 = vector.shape_cast %251 : vector<8x1xi1> to vector<8x1xi1>
    %267 = vector.broadcast %266 : vector<8x1xi1> to vector<8x8xi1>
    %268 = vector.broadcast %cst_50 : f32 to vector<8x8xf32>
    %269 = arith.select %267, %240, %268 : vector<8x8xi1>, vector<8x8xf32>
    %cst_51 = arith.constant dense<0.000000e+00> : vector<8xf32>
    %270 = vector.multi_reduction <add>, %269, %cst_51 [0] : vector<8x8xf32> to vector<8xf32>
    %271 = vector.shape_cast %270 : vector<8xf32> to vector<1x8xf32>
    %272 = vector.broadcast %265 : vector<1x1xf32> to vector<1x8xf32>
    %273 = arith.mulf %271, %272 : vector<1x8xf32>
    %cst_52 = arith.constant 0.000000e+00 : f32
    %274 = vector.shape_cast %251 : vector<8x1xi1> to vector<8x1xi1>
    %275 = vector.broadcast %274 : vector<8x1xi1> to vector<8x8xi1>
    %276 = vector.broadcast %cst_52 : f32 to vector<8x8xf32>
    %277 = arith.select %275, %249, %276 : vector<8x8xi1>, vector<8x8xf32>
    %cst_53 = arith.constant dense<0.000000e+00> : vector<8xf32>
    %278 = vector.multi_reduction <add>, %277, %cst_53 [0] : vector<8x8xf32> to vector<8xf32>
    %279 = vector.shape_cast %278 : vector<8xf32> to vector<1x8xf32>
    %280 = vector.broadcast %265 : vector<1x1xf32> to vector<1x8xf32>
    %281 = arith.mulf %279, %280 : vector<1x8xf32>
    %cst_54 = arith.constant 0.000000e+00 : f32
    %282 = vector.shape_cast %253 : vector<1x8xi1> to vector<1x8xi1>
    %283 = vector.broadcast %282 : vector<1x8xi1> to vector<8x8xi1>
    %284 = vector.broadcast %cst_54 : f32 to vector<8x8xf32>
    %285 = arith.select %283, %240, %284 : vector<8x8xi1>, vector<8x8xf32>
    %cst_55 = arith.constant dense<0.000000e+00> : vector<8xf32>
    %286 = vector.multi_reduction <add>, %285, %cst_55 [1] : vector<8x8xf32> to vector<8xf32>
    %287 = vector.shape_cast %286 : vector<8xf32> to vector<8x1xf32>
    %288 = vector.broadcast %287 : vector<8x1xf32> to vector<8x8xf32>
    %289 = vector.broadcast %273 : vector<1x8xf32> to vector<8x8xf32>
    %290 = arith.mulf %288, %289 : vector<8x8xf32>
    %291 = arith.subf %240, %290 : vector<8x8xf32>
    %292 = vector.shape_cast %251 : vector<8x1xi1> to vector<8x1xi1>
    %293 = vector.broadcast %292 : vector<8x1xi1> to vector<8x8xi1>
    %294 = vector.shape_cast %273 : vector<1x8xf32> to vector<1x8xf32>
    %295 = vector.broadcast %294 : vector<1x8xf32> to vector<8x8xf32>
    %296 = arith.select %293, %295, %291 : vector<8x8xi1>, vector<8x8xf32>
    %297 = vector.broadcast %287 : vector<8x1xf32> to vector<8x8xf32>
    %298 = vector.broadcast %281 : vector<1x8xf32> to vector<8x8xf32>
    %299 = arith.mulf %297, %298 : vector<8x8xf32>
    %300 = arith.subf %249, %299 : vector<8x8xf32>
    %301 = vector.shape_cast %251 : vector<8x1xi1> to vector<8x1xi1>
    %302 = vector.broadcast %301 : vector<8x1xi1> to vector<8x8xi1>
    %303 = vector.shape_cast %281 : vector<1x8xf32> to vector<1x8xf32>
    %304 = vector.broadcast %303 : vector<1x8xf32> to vector<8x8xf32>
    %305 = arith.select %302, %304, %300 : vector<8x8xi1>, vector<8x8xf32>
    %c5_i32 = arith.constant 5 : i32
    %306 = vector.broadcast %c5_i32 : i32 to vector<8x1xi32>
    %307 = arith.cmpi eq, %14, %306 : vector<8x1xi32>
    %c5_i32_56 = arith.constant 5 : i32
    %308 = vector.broadcast %c5_i32_56 : i32 to vector<1x8xi32>
    %309 = arith.cmpi eq, %15, %308 : vector<1x8xi32>
    %310 = vector.broadcast %307 : vector<8x1xi1> to vector<8x8xi1>
    %311 = vector.broadcast %309 : vector<1x8xi1> to vector<8x8xi1>
    %312 = arith.andi %310, %311 : vector<8x8xi1>
    %cst_57 = arith.constant 0.000000e+00 : f32
    %313 = vector.broadcast %cst_57 : f32 to vector<8x8xf32>
    %314 = arith.select %312, %296, %313 : vector<8x8xi1>, vector<8x8xf32>
    %315 = vector.shape_cast %314 : vector<8x8xf32> to vector<1x8x8xf32>
    %cst_58 = arith.constant dense<0.000000e+00> : vector<1xf32>
    %316 = vector.multi_reduction <add>, %315, %cst_58 [1, 2] : vector<1x8x8xf32> to vector<1xf32>
    %317 = vector.shape_cast %316 : vector<1xf32> to vector<1x1x1xf32>
    %318 = vector.extract %317[0, 0, 0] : f32 from vector<1x1x1xf32>
    %319 = vector.broadcast %318 : f32 to vector<1x1xf32>
    %cst_59 = arith.constant 1.000000e+00 : f32
    %320 = vector.broadcast %cst_59 : f32 to vector<1x1xf32>
    %321 = arith.divf %320, %319 : vector<1x1xf32>
    %cst_60 = arith.constant 0.000000e+00 : f32
    %322 = vector.shape_cast %307 : vector<8x1xi1> to vector<8x1xi1>
    %323 = vector.broadcast %322 : vector<8x1xi1> to vector<8x8xi1>
    %324 = vector.broadcast %cst_60 : f32 to vector<8x8xf32>
    %325 = arith.select %323, %296, %324 : vector<8x8xi1>, vector<8x8xf32>
    %cst_61 = arith.constant dense<0.000000e+00> : vector<8xf32>
    %326 = vector.multi_reduction <add>, %325, %cst_61 [0] : vector<8x8xf32> to vector<8xf32>
    %327 = vector.shape_cast %326 : vector<8xf32> to vector<1x8xf32>
    %328 = vector.broadcast %321 : vector<1x1xf32> to vector<1x8xf32>
    %329 = arith.mulf %327, %328 : vector<1x8xf32>
    %cst_62 = arith.constant 0.000000e+00 : f32
    %330 = vector.shape_cast %307 : vector<8x1xi1> to vector<8x1xi1>
    %331 = vector.broadcast %330 : vector<8x1xi1> to vector<8x8xi1>
    %332 = vector.broadcast %cst_62 : f32 to vector<8x8xf32>
    %333 = arith.select %331, %305, %332 : vector<8x8xi1>, vector<8x8xf32>
    %cst_63 = arith.constant dense<0.000000e+00> : vector<8xf32>
    %334 = vector.multi_reduction <add>, %333, %cst_63 [0] : vector<8x8xf32> to vector<8xf32>
    %335 = vector.shape_cast %334 : vector<8xf32> to vector<1x8xf32>
    %336 = vector.broadcast %321 : vector<1x1xf32> to vector<1x8xf32>
    %337 = arith.mulf %335, %336 : vector<1x8xf32>
    %cst_64 = arith.constant 0.000000e+00 : f32
    %338 = vector.shape_cast %309 : vector<1x8xi1> to vector<1x8xi1>
    %339 = vector.broadcast %338 : vector<1x8xi1> to vector<8x8xi1>
    %340 = vector.broadcast %cst_64 : f32 to vector<8x8xf32>
    %341 = arith.select %339, %296, %340 : vector<8x8xi1>, vector<8x8xf32>
    %cst_65 = arith.constant dense<0.000000e+00> : vector<8xf32>
    %342 = vector.multi_reduction <add>, %341, %cst_65 [1] : vector<8x8xf32> to vector<8xf32>
    %343 = vector.shape_cast %342 : vector<8xf32> to vector<8x1xf32>
    %344 = vector.broadcast %343 : vector<8x1xf32> to vector<8x8xf32>
    %345 = vector.broadcast %329 : vector<1x8xf32> to vector<8x8xf32>
    %346 = arith.mulf %344, %345 : vector<8x8xf32>
    %347 = arith.subf %296, %346 : vector<8x8xf32>
    %348 = vector.shape_cast %307 : vector<8x1xi1> to vector<8x1xi1>
    %349 = vector.broadcast %348 : vector<8x1xi1> to vector<8x8xi1>
    %350 = vector.shape_cast %329 : vector<1x8xf32> to vector<1x8xf32>
    %351 = vector.broadcast %350 : vector<1x8xf32> to vector<8x8xf32>
    %352 = arith.select %349, %351, %347 : vector<8x8xi1>, vector<8x8xf32>
    %353 = vector.broadcast %343 : vector<8x1xf32> to vector<8x8xf32>
    %354 = vector.broadcast %337 : vector<1x8xf32> to vector<8x8xf32>
    %355 = arith.mulf %353, %354 : vector<8x8xf32>
    %356 = arith.subf %305, %355 : vector<8x8xf32>
    %357 = vector.shape_cast %307 : vector<8x1xi1> to vector<8x1xi1>
    %358 = vector.broadcast %357 : vector<8x1xi1> to vector<8x8xi1>
    %359 = vector.shape_cast %337 : vector<1x8xf32> to vector<1x8xf32>
    %360 = vector.broadcast %359 : vector<1x8xf32> to vector<8x8xf32>
    %361 = arith.select %358, %360, %356 : vector<8x8xi1>, vector<8x8xf32>
    %c6_i32 = arith.constant 6 : i32
    %362 = vector.broadcast %c6_i32 : i32 to vector<8x1xi32>
    %363 = arith.cmpi eq, %14, %362 : vector<8x1xi32>
    %c6_i32_66 = arith.constant 6 : i32
    %364 = vector.broadcast %c6_i32_66 : i32 to vector<1x8xi32>
    %365 = arith.cmpi eq, %15, %364 : vector<1x8xi32>
    %366 = vector.broadcast %363 : vector<8x1xi1> to vector<8x8xi1>
    %367 = vector.broadcast %365 : vector<1x8xi1> to vector<8x8xi1>
    %368 = arith.andi %366, %367 : vector<8x8xi1>
    %cst_67 = arith.constant 0.000000e+00 : f32
    %369 = vector.broadcast %cst_67 : f32 to vector<8x8xf32>
    %370 = arith.select %368, %352, %369 : vector<8x8xi1>, vector<8x8xf32>
    %371 = vector.shape_cast %370 : vector<8x8xf32> to vector<1x8x8xf32>
    %cst_68 = arith.constant dense<0.000000e+00> : vector<1xf32>
    %372 = vector.multi_reduction <add>, %371, %cst_68 [1, 2] : vector<1x8x8xf32> to vector<1xf32>
    %373 = vector.shape_cast %372 : vector<1xf32> to vector<1x1x1xf32>
    %374 = vector.extract %373[0, 0, 0] : f32 from vector<1x1x1xf32>
    %375 = vector.broadcast %374 : f32 to vector<1x1xf32>
    %cst_69 = arith.constant 1.000000e+00 : f32
    %376 = vector.broadcast %cst_69 : f32 to vector<1x1xf32>
    %377 = arith.divf %376, %375 : vector<1x1xf32>
    %cst_70 = arith.constant 0.000000e+00 : f32
    %378 = vector.shape_cast %363 : vector<8x1xi1> to vector<8x1xi1>
    %379 = vector.broadcast %378 : vector<8x1xi1> to vector<8x8xi1>
    %380 = vector.broadcast %cst_70 : f32 to vector<8x8xf32>
    %381 = arith.select %379, %352, %380 : vector<8x8xi1>, vector<8x8xf32>
    %cst_71 = arith.constant dense<0.000000e+00> : vector<8xf32>
    %382 = vector.multi_reduction <add>, %381, %cst_71 [0] : vector<8x8xf32> to vector<8xf32>
    %383 = vector.shape_cast %382 : vector<8xf32> to vector<1x8xf32>
    %384 = vector.broadcast %377 : vector<1x1xf32> to vector<1x8xf32>
    %385 = arith.mulf %383, %384 : vector<1x8xf32>
    %cst_72 = arith.constant 0.000000e+00 : f32
    %386 = vector.shape_cast %363 : vector<8x1xi1> to vector<8x1xi1>
    %387 = vector.broadcast %386 : vector<8x1xi1> to vector<8x8xi1>
    %388 = vector.broadcast %cst_72 : f32 to vector<8x8xf32>
    %389 = arith.select %387, %361, %388 : vector<8x8xi1>, vector<8x8xf32>
    %cst_73 = arith.constant dense<0.000000e+00> : vector<8xf32>
    %390 = vector.multi_reduction <add>, %389, %cst_73 [0] : vector<8x8xf32> to vector<8xf32>
    %391 = vector.shape_cast %390 : vector<8xf32> to vector<1x8xf32>
    %392 = vector.broadcast %377 : vector<1x1xf32> to vector<1x8xf32>
    %393 = arith.mulf %391, %392 : vector<1x8xf32>
    %cst_74 = arith.constant 0.000000e+00 : f32
    %394 = vector.shape_cast %365 : vector<1x8xi1> to vector<1x8xi1>
    %395 = vector.broadcast %394 : vector<1x8xi1> to vector<8x8xi1>
    %396 = vector.broadcast %cst_74 : f32 to vector<8x8xf32>
    %397 = arith.select %395, %352, %396 : vector<8x8xi1>, vector<8x8xf32>
    %cst_75 = arith.constant dense<0.000000e+00> : vector<8xf32>
    %398 = vector.multi_reduction <add>, %397, %cst_75 [1] : vector<8x8xf32> to vector<8xf32>
    %399 = vector.shape_cast %398 : vector<8xf32> to vector<8x1xf32>
    %400 = vector.broadcast %399 : vector<8x1xf32> to vector<8x8xf32>
    %401 = vector.broadcast %385 : vector<1x8xf32> to vector<8x8xf32>
    %402 = arith.mulf %400, %401 : vector<8x8xf32>
    %403 = arith.subf %352, %402 : vector<8x8xf32>
    %404 = vector.shape_cast %363 : vector<8x1xi1> to vector<8x1xi1>
    %405 = vector.broadcast %404 : vector<8x1xi1> to vector<8x8xi1>
    %406 = vector.shape_cast %385 : vector<1x8xf32> to vector<1x8xf32>
    %407 = vector.broadcast %406 : vector<1x8xf32> to vector<8x8xf32>
    %408 = arith.select %405, %407, %403 : vector<8x8xi1>, vector<8x8xf32>
    %409 = vector.broadcast %399 : vector<8x1xf32> to vector<8x8xf32>
    %410 = vector.broadcast %393 : vector<1x8xf32> to vector<8x8xf32>
    %411 = arith.mulf %409, %410 : vector<8x8xf32>
    %412 = arith.subf %361, %411 : vector<8x8xf32>
    %413 = vector.shape_cast %363 : vector<8x1xi1> to vector<8x1xi1>
    %414 = vector.broadcast %413 : vector<8x1xi1> to vector<8x8xi1>
    %415 = vector.shape_cast %393 : vector<1x8xf32> to vector<1x8xf32>
    %416 = vector.broadcast %415 : vector<1x8xf32> to vector<8x8xf32>
    %417 = arith.select %414, %416, %412 : vector<8x8xi1>, vector<8x8xf32>
    %c7_i32 = arith.constant 7 : i32
    %418 = vector.broadcast %c7_i32 : i32 to vector<8x1xi32>
    %419 = arith.cmpi eq, %14, %418 : vector<8x1xi32>
    %c7_i32_76 = arith.constant 7 : i32
    %420 = vector.broadcast %c7_i32_76 : i32 to vector<1x8xi32>
    %421 = arith.cmpi eq, %15, %420 : vector<1x8xi32>
    %422 = vector.broadcast %419 : vector<8x1xi1> to vector<8x8xi1>
    %423 = vector.broadcast %421 : vector<1x8xi1> to vector<8x8xi1>
    %424 = arith.andi %422, %423 : vector<8x8xi1>
    %cst_77 = arith.constant 0.000000e+00 : f32
    %425 = vector.broadcast %cst_77 : f32 to vector<8x8xf32>
    %426 = arith.select %424, %408, %425 : vector<8x8xi1>, vector<8x8xf32>
    %427 = vector.shape_cast %426 : vector<8x8xf32> to vector<1x8x8xf32>
    %cst_78 = arith.constant dense<0.000000e+00> : vector<1xf32>
    %428 = vector.multi_reduction <add>, %427, %cst_78 [1, 2] : vector<1x8x8xf32> to vector<1xf32>
    %429 = vector.shape_cast %428 : vector<1xf32> to vector<1x1x1xf32>
    %430 = vector.extract %429[0, 0, 0] : f32 from vector<1x1x1xf32>
    %431 = vector.broadcast %430 : f32 to vector<1x1xf32>
    %cst_79 = arith.constant 1.000000e+00 : f32
    %432 = vector.broadcast %cst_79 : f32 to vector<1x1xf32>
    %433 = arith.divf %432, %431 : vector<1x1xf32>
    %cst_80 = arith.constant 0.000000e+00 : f32
    %434 = vector.shape_cast %419 : vector<8x1xi1> to vector<8x1xi1>
    %435 = vector.broadcast %434 : vector<8x1xi1> to vector<8x8xi1>
    %436 = vector.broadcast %cst_80 : f32 to vector<8x8xf32>
    %437 = arith.select %435, %417, %436 : vector<8x8xi1>, vector<8x8xf32>
    %cst_81 = arith.constant dense<0.000000e+00> : vector<8xf32>
    %438 = vector.multi_reduction <add>, %437, %cst_81 [0] : vector<8x8xf32> to vector<8xf32>
    %439 = vector.shape_cast %438 : vector<8xf32> to vector<1x8xf32>
    %440 = vector.broadcast %433 : vector<1x1xf32> to vector<1x8xf32>
    %441 = arith.mulf %439, %440 : vector<1x8xf32>
    %cst_82 = arith.constant 0.000000e+00 : f32
    %442 = vector.shape_cast %421 : vector<1x8xi1> to vector<1x8xi1>
    %443 = vector.broadcast %442 : vector<1x8xi1> to vector<8x8xi1>
    %444 = vector.broadcast %cst_82 : f32 to vector<8x8xf32>
    %445 = arith.select %443, %408, %444 : vector<8x8xi1>, vector<8x8xf32>
    %cst_83 = arith.constant dense<0.000000e+00> : vector<8xf32>
    %446 = vector.multi_reduction <add>, %445, %cst_83 [1] : vector<8x8xf32> to vector<8xf32>
    %447 = vector.shape_cast %446 : vector<8xf32> to vector<8x1xf32>
    %448 = vector.broadcast %447 : vector<8x1xf32> to vector<8x8xf32>
    %449 = vector.broadcast %441 : vector<1x8xf32> to vector<8x8xf32>
    %450 = arith.mulf %448, %449 : vector<8x8xf32>
    %451 = arith.subf %417, %450 : vector<8x8xf32>
    %452 = vector.shape_cast %419 : vector<8x1xi1> to vector<8x1xi1>
    %453 = vector.broadcast %452 : vector<8x1xi1> to vector<8x8xi1>
    %454 = vector.shape_cast %441 : vector<1x8xf32> to vector<1x8xf32>
    %455 = vector.broadcast %454 : vector<1x8xf32> to vector<8x8xf32>
    %456 = arith.select %453, %455, %451 : vector<8x8xi1>, vector<8x8xf32>
    %cst_84 = arith.constant dense<0.000000e+00> : vector<8x8xf32>
    %457 = tpu.matmul %25, %456, %cst_84 {dimension_numbers = #tpu.dot_dimension_numbers<[1], [0], [0], [1], [0, 0, 1, 1], [], []>} : vector<8x8xf32>, vector<8x8xf32>, vector<8x8xf32> -> vector<8x8xf32>
    %cst_85 = arith.constant dense<0xFF800000> : vector<8xf32>
    %458 = vector.multi_reduction <maximumf>, %457, %cst_85 [1] : vector<8x8xf32> to vector<8xf32>
    %459 = vector.shape_cast %458 : vector<8xf32> to vector<8x1xf32>
    %460 = vector.broadcast %459 : vector<8x1xf32> to vector<8x8xf32>
    %461 = arith.subf %457, %460 : vector<8x8xf32>
    %462 = math.exp %461 : vector<8x8xf32>
    %cst_86 = arith.constant dense<0.000000e+00> : vector<8xf32>
    %463 = vector.multi_reduction <add>, %462, %cst_86 [1] : vector<8x8xf32> to vector<8xf32>
    %464 = vector.shape_cast %463 : vector<8xf32> to vector<8x1xf32>
    %465 = math.log %464 : vector<8x1xf32>
    %466 = arith.addf %459, %465 : vector<8x1xf32>
    %467 = arith.mulf %457, %20 : vector<8x8xf32>
    %cst_87 = arith.constant dense<0.000000e+00> : vector<8xf32>
    %468 = vector.multi_reduction <add>, %467, %cst_87 [1] : vector<8x8xf32> to vector<8xf32>
    %469 = vector.shape_cast %468 : vector<8xf32> to vector<8x1xf32>
    %470 = arith.subf %466, %469 : vector<8x1xf32>
    %471 = vector.shape_cast %470 : vector<8x1xf32> to vector<1x8x1xf32>
    %cst_88 = arith.constant dense<0.000000e+00> : vector<1xf32>
    %472 = vector.multi_reduction <add>, %471, %cst_88 [1, 2] : vector<1x8x1xf32> to vector<1xf32>
    %473 = vector.shape_cast %472 : vector<1xf32> to vector<1x1x1xf32>
    %474 = vector.extract %473[0, 0, 0] : f32 from vector<1x1x1xf32>
    %475 = vector.broadcast %474 : f32 to vector<1x1xf32>
    %cst_89 = arith.constant 1.250000e-01 : f32
    %476 = vector.broadcast %cst_89 : f32 to vector<1x1xf32>
    %477 = arith.mulf %475, %476 : vector<1x1xf32>
    %478 = vector.broadcast %459 : vector<8x1xf32> to vector<8x8xf32>
    %479 = arith.cmpf oge, %457, %478 : vector<8x8xf32>
    %c8_i32 = arith.constant 8 : i32
    %480 = vector.shape_cast %15 : vector<1x8xi32> to vector<1x8xi32>
    %481 = vector.broadcast %480 : vector<1x8xi32> to vector<8x8xi32>
    %482 = vector.broadcast %c8_i32 : i32 to vector<8x8xi32>
    %483 = arith.select %479, %481, %482 : vector<8x8xi1>, vector<8x8xi32>
    %cst_90 = arith.constant dense<2147483647> : vector<8xi32>
    %484 = vector.multi_reduction <minsi>, %483, %cst_90 [1] : vector<8x8xi32> to vector<8xi32>
    %485 = vector.shape_cast %484 : vector<8xi32> to vector<8x1xi32>
    %486 = arith.cmpi eq, %485, %14 : vector<8x1xi32>
    %487 = arith.extui %486 : vector<8x1xi1> to vector<8x1xi32>
    %488 = arith.sitofp %487 : vector<8x1xi32> to vector<8x1xf32>
    %489 = vector.shape_cast %488 : vector<8x1xf32> to vector<1x8x1xf32>
    %cst_91 = arith.constant dense<0.000000e+00> : vector<1xf32>
    %490 = vector.multi_reduction <add>, %489, %cst_91 [1, 2] : vector<1x8x1xf32> to vector<1xf32>
    %491 = vector.shape_cast %490 : vector<1xf32> to vector<1x1x1xf32>
    %492 = vector.extract %491[0, 0, 0] : f32 from vector<1x1x1xf32>
    %493 = vector.broadcast %492 : f32 to vector<1x1xf32>
    %cst_92 = arith.constant 1.250000e-01 : f32
    %494 = vector.broadcast %cst_92 : f32 to vector<1x1xf32>
    %495 = arith.mulf %493, %494 : vector<1x1xf32>
    %496 = tpu.iota {dimensions = array<i32: 1>} : vector<1x2xi32>
    %c0_i32_93 = arith.constant 0 : i32
    %497 = vector.broadcast %c0_i32_93 : i32 to vector<1x2xi32>
    %498 = arith.cmpi eq, %496, %497 : vector<1x2xi32>
    %499 = vector.shape_cast %477 : vector<1x1xf32> to vector<1x1xf32>
    %500 = vector.broadcast %499 : vector<1x1xf32> to vector<1x2xf32>
    %501 = vector.shape_cast %495 : vector<1x1xf32> to vector<1x1xf32>
    %502 = vector.broadcast %501 : vector<1x1xf32> to vector<1x2xf32>
    %503 = arith.select %498, %500, %502 : vector<1x2xi1>, vector<1x2xf32>
    %c0_94 = arith.constant 0 : index
    %c0_95 = arith.constant 0 : index
    %c0_96 = arith.constant 0 : index
    %504 = vector.load %arg2[%c0_94, %c0_95, %c0_96] : memref<1x1x2xf32, #tpu.memory_space<vmem>>, vector<1x1x2xf32>
    %505 = vector.shape_cast %504 : vector<1x1x2xf32> to vector<1x2xf32>
    %506 = vector.shape_cast %503 : vector<1x2xf32> to vector<1x1x2xf32>
    tpu.vector_store %arg2[%c0_94, %c0_95, %c0_96], %506 {strides = array<i32>} : memref<1x1x2xf32, #tpu.memory_space<vmem>>, vector<1x1x2xf32>,
    return
  }
  func.func @transform_0(%arg0: i32) -> (i32, i32, i32) {
    %c0_i32 = arith.constant 0 : i32
    %c0_i32_0 = arith.constant 0 : i32
    %c0_i32_1 = arith.constant 0 : i32
    return %arg0, %c0_i32, %c0_i32_0 : i32, i32, i32
  }
  func.func @transform_1(%arg0: i32) -> (i32, i32, i32) {
    %c0_i32 = arith.constant 0 : i32
    %c0_i32_0 = arith.constant 0 : i32
    %c0_i32_1 = arith.constant 0 : i32
    return %arg0, %c0_i32, %c0_i32_0 : i32, i32, i32
  }
}

</mosaic_0001>

<bundles_post_ra>
// kernel: tpu_custom_call.1
= control target key start
LH: loop header
LB: loop body
LE: loop exit
PB: predicated region body
PF: predicated region fallthrough
CT: control target
= control target key end

     0   :  { %6 = vsyncpa [#allocation3], 0  ;;  %s1278_s0 = inlined_call_operand.hbm [shape: f32[4,16,32], index: 0, kind: input, shape index: {}]   ;;  %s1279_s1 = inlined_call_operand.vmem [shape: f32[4,1,2], index: 1, kind: output, shape index: {}]  }
   0x1   :  { %8 = vsyncpa [#allocation3 + $0x1], 0  ;;  %s1016_s6 = smov 0   ;;  %s1018_s7 = smov 0  }
   0x2   :  { %s1020_s8 = smov 0   ;;  %s1022_s9 = smov 0  }
   0x3 LB: > { %s1035_s10 = sadd.s32 4294967295, %s999_s9   ;;  %s1038_s11 = sadd.s32 1, %s999_s9   ;;  %s999_s9 = sphi %s1022_s9, %s1288_s9   ;;  %s995_s8 = sphi %s1020_s8, %s1287_s8   ;;  %s991_s7 = sphi %s1018_s7, %s1286_s7   ;;  %s987_s6 = sphi %s1016_s6, %s1285_s6  }
   0x4   : > { %s18_s12 = ssub.s32 %s999_s9, %s1038_s11  ;;  %s21_s13 = sadd.s32 1, %s995_s8 }
   0x5   : > { %p19_p0 = scmp.eq.s32.totalorder %s18_s12, 0  ;;  %p28_p1 = scmp.ne.s32.totalorder %s995_s8, %s991_s7 }
   0x6   : > { %p29_p2 = scmp.eq.s32.totalorder %s999_s9, 0  ;;  %p34_p3 = scmp.ne.s32.totalorder %s991_s7, %s987_s6 }
   0x7   : > { %s1048_s14 = scalar_select %p19_p0, %s995_s8, %s21_s13  }
   0x8   : > { %p30_p4 = por %p29_p2, %p28_p1  ;;  %p35_p5 = scmp.eq.s32.totalorder %s1035_s10, 0 }
   0x9   : > { %p876_p6 = scmp.lt.s32.totalorder %s999_s9, 4  ;;  %s84_s16 = sand.u32 1, %s995_s8  }
   0xa   : > { %p1052_p7 = por %p35_p5, %p34_p3  ;;  %s821_s17 = sshll.u32 %s84_s16, 4 }
   0xb   : > { %s834_s18 = sshll.u32 %s999_s9, 8  ;;  %s88_s22 = scalar_lea.vmem [#allocation2], %s821_s17 }
   0xc   : > { %s1281_s15 = scalar_select %p1052_p7, 1, 0 }
   0xd   : > { %s1061_s21 = scalar_lea.hbm %s1278_s0, %s834_s18  ;;  %s95_s23 = sshll.u32 %s88_s22, 4  ;;  %s1063_s23 = int_to_ptr.vmem [resolvable:$true] %s95_s23 }
   0xe   : > { %p1065_p8 = pnand %p876_p6, %p30_p4  ;;  %s1070_s25 = scalar_lea.sflag [#allocation3], %s84_s16 }
   0xf   : > { %s937_s26 = scalar_lea.hbm %s1061_s21, 256  ;;  %s942_s29 = scalar_lea.hbm %s1278_s0, 1024 }
  0x10   : > { %p938_p10 = scmp.ne.s32.totalorder %s1061_s21, %s937_s26  ;;  %p939_p11 = pneg %p1065_p8 }
  0x11   : > { %p943_p0 = scmp.lt.s32.totalorder %s1061_s21, %s1278_s0  ;;  %p944_p1 = scmp.lt.s32.totalorder %s942_s29, %s937_s26 }
  0x12   : > { %p940_p12 = pnand %p939_p11, %p938_p10 }
  0x13   : > { %p945_p2 = por %p944_p1, %p943_p0 }
  0x14   : > { %p941_p13 = pneg %p940_p12 }
  0x16   : > { %p946_p3 = pnand %p945_p2, %p941_p13 }
  0x18   : > { %949 = shalt.err (!%p946_p3)
}
  0x19   : > { %s950_s3 = scalar_lea.vmem %s1063_s23, 256  ;;  %s1001_s4 = smov [#allocation2]  }
  0x1a   : > { %p951_p4 = scmp.ne.s32.totalorder %s1063_s23, %s950_s3  ;;  %s955_s5 = sshll.u32 %s1001_s4, 4  ;;  %s956_s5 = int_to_ptr.vmem [resolvable:$false] %s955_s5 }
  0x1b   : > { %s957_s6 = scalar_lea.vmem %s956_s5, 512  ;;  %p958_p10 = scmp.lt.s32.totalorder %s1063_s23, %s956_s5 }
  0x1c   : > { %p953_p5 = pnand %p951_p4, %p939_p11  ;;  %p959_p12 = scmp.lt.s32.totalorder %s957_s6, %s950_s3 }
  0x1e   : > { %p954_p6 = pneg %p953_p5  ;;  %p960_p9 = por %p959_p12, %p958_p10 }
  0x20   : > { %p961_p7 = pnand %p960_p9, %p954_p6 }
  0x22   : > { %964 = shalt.err (!%p961_p7)
}
  0x23   : > { %s1002_s12 = smov 128   ;;  %s1003_s13 = smov 8  }
  0x24   : > { %875 = dma.hbm_to_vmem [thread:$0]  (!%p1065_p8), %s1061_s21, 256, %s1063_s23, %s1070_s25, %s1002_s12, %s1002_s12, %s1003_s13  }
  0x25   : > { %p103_p11 = scmp.lt.s32.totalorder %s999_s9, 5  ;;  %p1283_p13 = scmp.ge.s32.totalorder %s999_s9, 1 }
  0x27   : > { %p104_p0 = pnand %p1283_p13, %p103_p11 }
  0x28   : > { %s109_s16 = sand.u32 (!%p104_p0), 1, %s991_s7   ;;  %p1284_p7 = scmp.ne.s32.totalorder (!%p104_p0), %s1281_s15, 0 }
  0x29   : > { %107 = sbr.rel (%p104_p0) target bundleno = 3030 (0xbd6), region = 24  ;;  %s825_s17 = sshll.u32 (!%p104_p0), %s109_s16, 4 }
  0x2a   : > { %s110_s18 = scalar_lea.sflag (!%p104_p0), [#allocation3], %s109_s16  ;;  %s113_s19 = scalar_lea.vmem (!%p104_p0), [#allocation2], %s825_s17 }
  0x2e   : > { %982 = dma.done.wait (%p1284_p7), %s110_s18, 256  }
  0x2f   : > { %984 = vsyncadd (%p1284_p7), %s110_s18, 4294967040  ;;  %v133_v0 = vld [vmem:[%s113_s19] sm:$0xff]  ;;  %vm137_vm0 = vcmask 261120   ;;  %v134_v1 = vld [vmem:[%s113_s19 + $0x8] sm:$0xff]  ;;  %v1004_v14 = vmov 0.0   ;;  %v231_v15 = vlaneseq  ;;  %vm248_vm5 = vcmask 64512  }
  0x30   : > { %v135_v2 = vmul.f32 %v133_v0, %v133_v0  ;;  %v136_v3 = vmul.f32 %v134_v1, %v134_v1  ;;  %845 = vmatprep.subr.mxu1 %v1004_v14  ;;  %p130_p8 = scmp.lt.s32.totalorder %s1035_s10, 3 }
  0x31   : > { %v1106_v16 = vshrl.u32 %v231_v15, 7  ;;  %v1108_v17 = vand.u32 127, %v231_v15 }
  0x32   : > { %v138_v4 = vsel %vm137_vm0, %v135_v2, 0.0  ;;  %v141_v5 = vsel %vm137_vm0, %v136_v3, 0.0  ;;  %s1290_s10 = smov (!%p130_p8, %s1035_s10), 3 }
  0x33   : > { %139 = vadd.xlane.f32.xlu0 %v138_v4  ;;  %vm235_vm1 = vcmp.eq.s32.totalorder %v1106_v16, %v1108_v17  ;;  %vm240_vm2 = vcmp.eq.s32.totalorder %v1106_v16, 0  ;;  %vm241_vm3 = vcmp.eq.s32.totalorder %v1108_v17, 0  ;;  %vm291_vm6 = vcmp.eq.s32.totalorder %v1108_v17, 1  ;;  %s132_s30 = scalar_lea.vmem %s1279_s1, %s1290_s10 }
  0x34   : > { %v1113_v18 = vsel %vm235_vm1, 1.0, %v1004_v14  ;;  %vm246_vm4 = vmand %vm240_vm2, %vm241_vm3  ;;  %vm290_vm7 = vcmp.eq.s32.totalorder %v1106_v16, 1  ;;  %vm340_vm9 = vcmp.eq.s32.totalorder %v1108_v17, 2  ;;  %vm339_vm10 = vcmp.eq.s32.totalorder %v1106_v16, 2 }
  0x35   : > { %v238_v19 = vmul.f32 50.0, %v1113_v18  ;;  %vm296_vm8 = vmand %vm290_vm7, %vm291_vm6  ;;  %v271_v56 = vsel %vm240_vm2, %v1113_v18, 0.0  ;;  %vm389_vm12 = vcmp.eq.s32.totalorder %v1108_v17, 3  ;;  %vm388_vm13 = vcmp.eq.s32.totalorder %v1106_v16, 3 }
  0x36   : > { %v272_v59 = vsel %vm248_vm5, %v271_v56, 0.0  ;;  %vm345_vm11 = vmand %vm339_vm10, %vm340_vm9  ;;  %vm438_vm15 = vcmp.eq.s32.totalorder %v1108_v17, 4 }
  0x37   : > { %142 = vadd.xlane.f32.xlu0 %v141_v5  ;;  %v273_v61 = vrot.slane %v272_v59, 4  ;;  %vm394_vm14 = vmand %vm388_vm13, %vm389_vm12 }
  0x39   : > { %v274_v63 = vadd.f32 %v273_v61, %v272_v59 }
  0xbc   : > { %v140_v6 = vpop.xlane.xlu0 %139 }
  0xbd   : > { %v144_v7 = vmax.f32 %v140_v6, 1e-24 }
  0xbf   : > { %913 = vrsqrt.f32 %v144_v7 }
  0xc0   : > { %v143_v8 = vpop.xlane.xlu0 %142 }
  0xc1   : > { %v145_v9 = vmax.f32 %v143_v8, 1e-24 }
  0xc3   : > { %915 = vrsqrt.f32 %v145_v9 }
  0xcc   : > { %v914_v10 = vpop.eup %913 }
  0xcd   : > { %v148_v11 = vmul.f32 %v914_v10, %v133_v0  ;;  %v275_v0 = vrot.slane %v274_v63, 2 }
  0xcf   : > { %840 = vmatprep.subr.msk.mxu0 %vm137_vm0, %v148_v11  ;;  %842 = vmatprep.mubr.msk.f32.mxu0 %vm137_vm0, %v148_v11 }
  0xd0   : > { %v916_v12 = vpop.eup %915  ;;  %841 = vmatpush3.xpose.msk.msra.mxu0 %vm137_vm0, %v148_v11 }
  0xd1   : > { %v149_v13 = vmul.f32 %v916_v12, %v134_v1  ;;  %v276_v1 = vadd.f32 %v275_v0, %v274_v63 }
  0xd3   : > { %843 = vmatmul.mubr.msk.f32.vlgmr.msra.gmra.mxu0 %vm137_vm0, %v149_v13  ;;  %v277_v2 = vrot.slane %v276_v1, 1  ;;  %vm437_vm0 = vcmp.eq.s32.totalorder %v1106_v16, 4 }
  0xd4   : > { %vm443_vm1 = vmand %vm437_vm0, %vm438_vm15 }
  0xd5   : > { %v278_v3 = vadd.f32 %v277_v2, %v276_v1 }
 0x193   : > { %v1118_v20 = vpop.f32.mrf.mxu0 }
 0x195   : > { %v222_v21 = vpop.f32.mrf.mxu0 }
 0x196   : > { %v239_v22 = vadd.f32 %v238_v19, %v222_v21 }
 0x198   : > { %v247_v23 = vsel %vm246_vm4, %v239_v22, 0.0  ;;  %v280_v25 = vsel %vm241_vm3, %v239_v22, 0.0  ;;  %v262_v34 = vsel %vm240_vm2, %v239_v22, 0.0  ;;  %vm486_vm4 = vcmp.eq.s32.totalorder %v1106_v16, 5 }
 0x199   : > { %v249_v24 = vsel %vm248_vm5, %v247_v23, 0.0  ;;  %v281_v26 = vsel %vm248_vm5, %v280_v25, 0.0  ;;  %v263_v35 = vsel %vm248_vm5, %v262_v34, 0.0 }
 0x19a   : > { %250 = vadd.xlane.f32.xlu1 %v249_v24  ;;  %v264_v36 = vrot.slane %v263_v35, 4 }
 0x19c   : > { %v265_v37 = vadd.f32 %v264_v36, %v263_v35 }
 0x19e   : > { %282 = vadd.xlane.f32.xlu1 %v281_v26  ;;  %v266_v39 = vrot.slane %v265_v37, 2 }
 0x1a0   : > { %v267_v40 = vadd.f32 %v266_v39, %v265_v37 }
 0x1a2   : > { %v268_v41 = vrot.slane %v267_v40, 1 }
 0x1a4   : > { %v269_v42 = vadd.f32 %v268_v41, %v267_v40 }
 0x223   : > { %v251_v27 = vpop.xlane.xlu1 %250 }
 0x224   : > { %v252_v28 = vrot.slane %v251_v27, 4 }
 0x226   : > { %v253_v29 = vadd.f32 %v252_v28, %v251_v27 }
 0x227   : > { %v283_v45 = vpop.xlane.xlu1 %282 }
 0x228   : > { %v254_v30 = vrot.slane %v253_v29, 2 }
 0x22a   : > { %v255_v31 = vadd.f32 %v254_v30, %v253_v29 }
 0x22c   : > { %v256_v32 = vrot.slane %v255_v31, 1 }
 0x22e   : > { %v257_v33 = vadd.f32 %v256_v32, %v255_v31 }
 0x230   : > { %850 = vpush %v257_v33 }
 0x261   : > { %s851_s9 = spop %850 }
 0x262   : > { %v259_v38 = vstv %s851_s9 }
 0x263   : > { %917 = vrcp.f32 %v259_v38 }
 0x270   : > { %v918_v43 = vpop.eup %917 }
 0x271   : > { %v270_v44 = vmul.f32 %v918_v43, %v269_v42  ;;  %v279_v4 = vmul.f32 %v918_v43, %v278_v3 }
 0x273   : > { %v284_v46 = vmul.f32 %v283_v45, %v270_v44  ;;  %v287_v5 = vmul.f32 %v283_v45, %v279_v4 }
 0x275   : > { %v285_v47 = vsub.f32 %v239_v22, %v284_v46  ;;  %v288_v6 = vsub.f32 %v1113_v18, %v287_v5 }
 0x277   : > { %v286_v48 = vsel %vm240_vm2, %v270_v44, %v285_v47  ;;  %v289_v7 = vsel %vm240_vm2, %v279_v4, %v288_v6  ;;  %vm487_vm2 = vcmp.eq.s32.totalorder %v1108_v17, 5 }
 0x278   : > { %v329_v49 = vsel %vm291_vm6, %v286_v48, 0.0  ;;  %v297_v50 = vsel %vm296_vm8, %v286_v48, 0.0  ;;  %v311_v8 = vsel %vm290_vm7, %v286_v48, 0.0  ;;  %v320_v9 = vsel %vm290_vm7, %v289_v7, 0.0  ;;  %vm492_vm6 = vmand %vm486_vm4, %vm487_vm2 }
 0x279   : > { %v330_v51 = vsel %vm248_vm5, %v329_v49, 0.0  ;;  %v298_v52 = vsel %vm248_vm5, %v297_v50, 0.0  ;;  %v312_v10 = vsel %vm248_vm5, %v311_v8, 0.0  ;;  %v321_v11 = vsel %vm248_vm5, %v320_v9, 0.0 }
 0x27a   : > { %331 = vadd.xlane.f32.xlu1 %v330_v51  ;;  %299 = vadd.xlane.f32.xlu0 %v298_v52  ;;  %v313_v12 = vrot.slane %v312_v10, 4  ;;  %v322_v13 = vrot.slane %v321_v11, 4  ;;  %vm535_vm8 = vcmp.eq.s32.totalorder %v1106_v16, 6 }
 0x27c   : > { %v323_v15 = vadd.f32 %v322_v13, %v321_v11  ;;  %v314_v19 = vadd.f32 %v313_v12, %v312_v10 }
 0x27e   : > { %v324_v22 = vrot.slane %v323_v15, 2  ;;  %v315_v23 = vrot.slane %v314_v19, 2 }
 0x280   : > { %v325_v24 = vadd.f32 %v324_v22, %v323_v15  ;;  %v316_v25 = vadd.f32 %v315_v23, %v314_v19 }
 0x282   : > { %v326_v26 = vrot.slane %v325_v24, 1  ;;  %v317_v27 = vrot.slane %v316_v25, 1 }
 0x284   : > { %v327_v28 = vadd.f32 %v326_v26, %v325_v24  ;;  %v318_v29 = vadd.f32 %v317_v27, %v316_v25 }
 0x303   : > { %v300_v53 = vpop.xlane.xlu0 %299  ;;  %v332_v33 = vpop.xlane.xlu1 %331 }
 0x304   : > { %v301_v54 = vrot.slane %v300_v53, 4 }
 0x306   : > { %v302_v55 = vadd.f32 %v301_v54, %v300_v53 }
 0x308   : > { %v303_v57 = vrot.slane %v302_v55, 2 }
 0x30a   : > { %v304_v58 = vadd.f32 %v303_v57, %v302_v55 }
 0x30c   : > { %v305_v60 = vrot.slane %v304_v58, 1 }
 0x30e   : > { %v306_v62 = vadd.f32 %v305_v60, %v304_v58 }
 0x310   : > { %852 = vpush %v306_v62 }
 0x341   : > { %s853_s15 = spop %852 }
 0x342   : > { %v308_v21 = vstv %s853_s15 }
 0x343   : > { %919 = vrcp.f32 %v308_v21 }
 0x350   : > { %v920_v30 = vpop.eup %919 }
 0x351   : > { %v328_v31 = vmul.f32 %v920_v30, %v327_v28  ;;  %v319_v32 = vmul.f32 %v920_v30, %v318_v29 }
 0x353   : > { %v336_v34 = vmul.f32 %v332_v33, %v328_v31  ;;  %v333_v35 = vmul.f32 %v332_v33, %v319_v32 }
 0x355   : > { %v337_v36 = vsub.f32 %v289_v7, %v336_v34  ;;  %v334_v37 = vsub.f32 %v286_v48, %v333_v35 }
 0x357   : > { %v335_v38 = vsel %vm290_vm7, %v319_v32, %v334_v37  ;;  %v338_v39 = vsel %vm290_vm7, %v328_v31, %v337_v36  ;;  %vm536_vm7 = vcmp.eq.s32.totalorder %v1108_v17, 6 }
 0x358   : > { %v378_v40 = vsel %vm340_vm9, %v335_v38, 0.0  ;;  %v346_v41 = vsel %vm345_vm11, %v335_v38, 0.0  ;;  %v360_v51 = vsel %vm339_vm10, %v335_v38, 0.0  ;;  %v369_v52 = vsel %vm339_vm10, %v338_v39, 0.0  ;;  %vm541_vm9 = vmand %vm535_vm8, %vm536_vm7 }
 0x359   : > { %v379_v42 = vsel %vm248_vm5, %v378_v40, 0.0  ;;  %v347_v43 = vsel %vm248_vm5, %v346_v41, 0.0  ;;  %v361_v53 = vsel %vm248_vm5, %v360_v51, 0.0  ;;  %v370_v54 = vsel %vm248_vm5, %v369_v52, 0.0 }
 0x35a   : > { %380 = vadd.xlane.f32.xlu1 %v379_v42  ;;  %348 = vadd.xlane.f32.xlu0 %v347_v43  ;;  %v362_v55 = vrot.slane %v361_v53, 4  ;;  %v371_v56 = vrot.slane %v370_v54, 4  ;;  %vm584_vm11 = vcmp.eq.s32.totalorder %v1106_v16, 7 }
 0x35c   : > { %v372_v57 = vadd.f32 %v371_v56, %v370_v54  ;;  %v363_v58 = vadd.f32 %v362_v55, %v361_v53 }
 0x35e   : > { %v373_v60 = vrot.slane %v372_v57, 2  ;;  %v364_v61 = vrot.slane %v363_v58, 2 }
 0x360   : > { %v374_v62 = vadd.f32 %v373_v60, %v372_v57  ;;  %v365_v63 = vadd.f32 %v364_v61, %v363_v58 }
 0x362   : > { %v375_v0 = vrot.slane %v374_v62, 1  ;;  %v366_v1 = vrot.slane %v365_v63, 1 }
 0x364   : > { %v376_v2 = vadd.f32 %v375_v0, %v374_v62  ;;  %v367_v3 = vadd.f32 %v366_v1, %v365_v63 }
 0x3e3   : > { %v349_v44 = vpop.xlane.xlu0 %348  ;;  %v381_v7 = vpop.xlane.xlu1 %380 }
 0x3e4   : > { %v350_v45 = vrot.slane %v349_v44, 4 }
 0x3e6   : > { %v351_v46 = vadd.f32 %v350_v45, %v349_v44 }
 0x3e8   : > { %v352_v47 = vrot.slane %v351_v46, 2 }
 0x3ea   : > { %v353_v48 = vadd.f32 %v352_v47, %v351_v46 }
 0x3ec   : > { %v354_v49 = vrot.slane %v353_v48, 1 }
 0x3ee   : > { %v355_v50 = vadd.f32 %v354_v49, %v353_v48 }
 0x3f0   : > { %854 = vpush %v355_v50 }
 0x421   : > { %s855_s20 = spop %854 }
 0x422   : > { %v357_v59 = vstv %s855_s20 }
 0x423   : > { %921 = vrcp.f32 %v357_v59 }
 0x430   : > { %v922_v4 = vpop.eup %921 }
 0x431   : > { %v377_v5 = vmul.f32 %v922_v4, %v376_v2  ;;  %v368_v6 = vmul.f32 %v922_v4, %v367_v3 }
 0x433   : > { %v385_v8 = vmul.f32 %v381_v7, %v377_v5  ;;  %v382_v9 = vmul.f32 %v381_v7, %v368_v6 }
 0x435   : > { %v386_v10 = vsub.f32 %v338_v39, %v385_v8  ;;  %v383_v11 = vsub.f32 %v335_v38, %v382_v9 }
 0x437   : > { %v384_v12 = vsel %vm339_vm10, %v368_v6, %v383_v11  ;;  %v387_v13 = vsel %vm339_vm10, %v377_v5, %v386_v10  ;;  %vm585_vm10 = vcmp.eq.s32.totalorder %v1108_v17, 7 }
 0x438   : > { %v427_v15 = vsel %vm389_vm12, %v384_v12, 0.0  ;;  %v395_v19 = vsel %vm394_vm14, %v384_v12, 0.0  ;;  %v409_v30 = vsel %vm388_vm13, %v384_v12, 0.0  ;;  %v418_v31 = vsel %vm388_vm13, %v387_v13, 0.0  ;;  %vm590_vm12 = vmand %vm584_vm11, %vm585_vm10 }
 0x439   : > { %v428_v21 = vsel %vm248_vm5, %v427_v15, 0.0  ;;  %v396_v22 = vsel %vm248_vm5, %v395_v19, 0.0  ;;  %v410_v32 = vsel %vm248_vm5, %v409_v30, 0.0  ;;  %v419_v33 = vsel %vm248_vm5, %v418_v31, 0.0 }
 0x43a   : > { %429 = vadd.xlane.f32.xlu1 %v428_v21  ;;  %397 = vadd.xlane.f32.xlu0 %v396_v22  ;;  %v411_v34 = vrot.slane %v410_v32, 4  ;;  %v420_v35 = vrot.slane %v419_v33, 4 }
 0x43c   : > { %v421_v36 = vadd.f32 %v420_v35, %v419_v33  ;;  %v412_v37 = vadd.f32 %v411_v34, %v410_v32 }
 0x43e   : > { %v422_v39 = vrot.slane %v421_v36, 2  ;;  %v413_v40 = vrot.slane %v412_v37, 2 }
 0x440   : > { %v423_v41 = vadd.f32 %v422_v39, %v421_v36  ;;  %v414_v42 = vadd.f32 %v413_v40, %v412_v37 }
 0x442   : > { %v424_v43 = vrot.slane %v423_v41, 1  ;;  %v415_v44 = vrot.slane %v414_v42, 1 }
 0x444   : > { %v425_v45 = vadd.f32 %v424_v43, %v423_v41  ;;  %v416_v46 = vadd.f32 %v415_v44, %v414_v42 }
 0x4c3   : > { %v398_v23 = vpop.xlane.xlu0 %397  ;;  %v430_v50 = vpop.xlane.xlu1 %429 }
 0x4c4   : > { %v399_v24 = vrot.slane %v398_v23, 4 }
 0x4c6   : > { %v400_v25 = vadd.f32 %v399_v24, %v398_v23 }
 0x4c8   : > { %v401_v26 = vrot.slane %v400_v25, 2 }
 0x4ca   : > { %v402_v27 = vadd.f32 %v401_v26, %v400_v25 }
 0x4cc   : > { %v403_v28 = vrot.slane %v402_v27, 1 }
 0x4ce   : > { %v404_v29 = vadd.f32 %v403_v28, %v402_v27 }
 0x4d0   : > { %856 = vpush %v404_v29 }
 0x501   : > { %s857_s21 = spop %856 }
 0x502   : > { %v406_v38 = vstv %s857_s21 }
 0x503   : > { %923 = vrcp.f32 %v406_v38 }
 0x510   : > { %v924_v47 = vpop.eup %923 }
 0x511   : > { %v426_v48 = vmul.f32 %v924_v47, %v425_v45  ;;  %v417_v49 = vmul.f32 %v924_v47, %v416_v46 }
 0x513   : > { %v434_v51 = vmul.f32 %v430_v50, %v426_v48  ;;  %v431_v52 = vmul.f32 %v430_v50, %v417_v49 }
 0x515   : > { %v435_v53 = vsub.f32 %v387_v13, %v434_v51  ;;  %v432_v54 = vsub.f32 %v384_v12, %v431_v52 }
 0x517   : > { %v433_v55 = vsel %vm388_vm13, %v417_v49, %v432_v54  ;;  %v436_v56 = vsel %vm388_vm13, %v426_v48, %v435_v53  ;;  %vm1005_vm13 = vmmov 0  }
 0x518   : > { %v476_v57 = vsel %vm438_vm15, %v433_v55, 0.0  ;;  %v444_v58 = vsel %vm443_vm1, %v433_v55, 0.0  ;;  %v458_v4 = vsel %vm437_vm0, %v433_v55, 0.0  ;;  %v467_v5 = vsel %vm437_vm0, %v436_v56, 0.0  ;;  %847 = vmatprep.mubr.msk.f32.mxu1 %vm1005_vm13, %v1004_v14 }
 0x519   : > { %v477_v59 = vsel %vm248_vm5, %v476_v57, 0.0  ;;  %v445_v60 = vsel %vm248_vm5, %v444_v58, 0.0  ;;  %v459_v6 = vsel %vm248_vm5, %v458_v4, 0.0  ;;  %v468_v7 = vsel %vm248_vm5, %v467_v5, 0.0 }
 0x51a   : > { %478 = vadd.xlane.f32.xlu1 %v477_v59  ;;  %446 = vadd.xlane.f32.xlu0 %v445_v60  ;;  %v460_v8 = vrot.slane %v459_v6, 4  ;;  %v469_v9 = vrot.slane %v468_v7, 4  ;;  %vm757_vm1 = vcmask 8192  }
 0x51c   : > { %v470_v10 = vadd.f32 %v469_v9, %v468_v7  ;;  %v461_v11 = vadd.f32 %v460_v8, %v459_v6 }
 0x51e   : > { %v471_v13 = vrot.slane %v470_v10, 2  ;;  %v462_v15 = vrot.slane %v461_v11, 2 }
 0x520   : > { %v472_v19 = vadd.f32 %v471_v13, %v470_v10  ;;  %v463_v21 = vadd.f32 %v462_v15, %v461_v11 }
 0x522   : > { %v473_v22 = vrot.slane %v472_v19, 1  ;;  %v464_v23 = vrot.slane %v463_v21, 1 }
 0x524   : > { %v474_v24 = vadd.f32 %v473_v22, %v472_v19  ;;  %v465_v25 = vadd.f32 %v464_v23, %v463_v21 }
 0x5a3   : > { %v447_v61 = vpop.xlane.xlu0 %446  ;;  %v479_v29 = vpop.xlane.xlu1 %478 }
 0x5a4   : > { %v448_v62 = vrot.slane %v447_v61, 4 }
 0x5a6   : > { %v449_v63 = vadd.f32 %v448_v62, %v447_v61 }
 0x5a8   : > { %v450_v0 = vrot.slane %v449_v63, 2 }
 0x5aa   : > { %v451_v1 = vadd.f32 %v450_v0, %v449_v63 }
 0x5ac   : > { %v452_v2 = vrot.slane %v451_v1, 1 }
 0x5ae   : > { %v453_v3 = vadd.f32 %v452_v2, %v451_v1 }
 0x5b0   : > { %858 = vpush %v453_v3 }
 0x5e1   : > { %s859_s22 = spop %858 }
 0x5e2   : > { %v455_v12 = vstv %s859_s22 }
 0x5e3   : > { %925 = vrcp.f32 %v455_v12 }
 0x5f0   : > { %v926_v26 = vpop.eup %925 }
 0x5f1   : > { %v475_v27 = vmul.f32 %v926_v26, %v474_v24  ;;  %v466_v28 = vmul.f32 %v926_v26, %v465_v25 }
 0x5f3   : > { %v483_v30 = vmul.f32 %v479_v29, %v475_v27  ;;  %v480_v31 = vmul.f32 %v479_v29, %v466_v28 }
 0x5f5   : > { %v484_v32 = vsub.f32 %v436_v56, %v483_v30  ;;  %v481_v33 = vsub.f32 %v433_v55, %v480_v31 }
 0x5f7   : > { %v482_v34 = vsel %vm437_vm0, %v466_v28, %v481_v33  ;;  %v485_v35 = vsel %vm437_vm0, %v475_v27, %v484_v32  ;;  %vm711_vm0 = vcmask 7168  }
 0x5f8   : > { %v525_v36 = vsel %vm487_vm2, %v482_v34, 0.0  ;;  %v493_v37 = vsel %vm492_vm6, %v482_v34, 0.0  ;;  %v507_v47 = vsel %vm486_vm4, %v482_v34, 0.0  ;;  %v516_v48 = vsel %vm486_vm4, %v485_v35, 0.0 }
 0x5f9   : > { %v526_v38 = vsel %vm248_vm5, %v525_v36, 0.0  ;;  %v494_v39 = vsel %vm248_vm5, %v493_v37, 0.0  ;;  %v508_v49 = vsel %vm248_vm5, %v507_v47, 0.0  ;;  %v517_v50 = vsel %vm248_vm5, %v516_v48, 0.0 }
 0x5fa   : > { %527 = vadd.xlane.f32.xlu1 %v526_v38  ;;  %495 = vadd.xlane.f32.xlu0 %v494_v39  ;;  %v509_v51 = vrot.slane %v508_v49, 4  ;;  %v518_v52 = vrot.slane %v517_v50, 4 }
 0x5fc   : > { %v519_v53 = vadd.f32 %v518_v52, %v517_v50  ;;  %v510_v54 = vadd.f32 %v509_v51, %v508_v49 }
 0x5fe   : > { %v520_v56 = vrot.slane %v519_v53, 2  ;;  %v511_v57 = vrot.slane %v510_v54, 2 }
 0x600   : > { %v521_v58 = vadd.f32 %v520_v56, %v519_v53  ;;  %v512_v59 = vadd.f32 %v511_v57, %v510_v54 }
 0x602   : > { %v522_v60 = vrot.slane %v521_v58, 1  ;;  %v513_v61 = vrot.slane %v512_v59, 1 }
 0x604   : > { %v523_v62 = vadd.f32 %v522_v60, %v521_v58  ;;  %v514_v63 = vadd.f32 %v513_v61, %v512_v59 }
 0x683   : > { %v496_v40 = vpop.xlane.xlu0 %495  ;;  %v528_v3 = vpop.xlane.xlu1 %527 }
 0x684   : > { %v497_v41 = vrot.slane %v496_v40, 4 }
 0x686   : > { %v498_v42 = vadd.f32 %v497_v41, %v496_v40 }
 0x688   : > { %v499_v43 = vrot.slane %v498_v42, 2 }
 0x68a   : > { %v500_v44 = vadd.f32 %v499_v43, %v498_v42 }
 0x68c   : > { %v501_v45 = vrot.slane %v500_v44, 1 }
 0x68e   : > { %v502_v46 = vadd.f32 %v501_v45, %v500_v44 }
 0x690   : > { %860 = vpush %v502_v46 }
 0x6c1   : > { %s861_s23 = spop %860 }
 0x6c2   : > { %v504_v55 = vstv %s861_s23 }
 0x6c3   : > { %927 = vrcp.f32 %v504_v55 }
 0x6d0   : > { %v928_v0 = vpop.eup %927 }
 0x6d1   : > { %v524_v1 = vmul.f32 %v928_v0, %v523_v62  ;;  %v515_v2 = vmul.f32 %v928_v0, %v514_v63 }
 0x6d3   : > { %v532_v4 = vmul.f32 %v528_v3, %v524_v1  ;;  %v529_v5 = vmul.f32 %v528_v3, %v515_v2 }
 0x6d5   : > { %v530_v6 = vsub.f32 %v482_v34, %v529_v5  ;;  %v533_v7 = vsub.f32 %v485_v35, %v532_v4 }
 0x6d7   : > { %v531_v8 = vsel %vm486_vm4, %v515_v2, %v530_v6  ;;  %v534_v9 = vsel %vm486_vm4, %v524_v1, %v533_v7 }
 0x6d8   : > { %v574_v10 = vsel %vm536_vm7, %v531_v8, 0.0  ;;  %v542_v11 = vsel %vm541_vm9, %v531_v8, 0.0  ;;  %v556_v26 = vsel %vm535_vm8, %v531_v8, 0.0  ;;  %v565_v27 = vsel %vm535_vm8, %v534_v9, 0.0 }
 0x6d9   : > { %v575_v12 = vsel %vm248_vm5, %v574_v10, 0.0  ;;  %v543_v13 = vsel %vm248_vm5, %v542_v11, 0.0  ;;  %v557_v28 = vsel %vm248_vm5, %v556_v26, 0.0  ;;  %v566_v29 = vsel %vm248_vm5, %v565_v27, 0.0 }
 0x6da   : > { %576 = vadd.xlane.f32.xlu1 %v575_v12  ;;  %544 = vadd.xlane.f32.xlu0 %v543_v13  ;;  %v558_v30 = vrot.slane %v557_v28, 4  ;;  %v567_v31 = vrot.slane %v566_v29, 4 }
 0x6dc   : > { %v559_v32 = vadd.f32 %v558_v30, %v557_v28  ;;  %v568_v33 = vadd.f32 %v567_v31, %v566_v29 }
 0x6de   : > { %v560_v35 = vrot.slane %v559_v32, 2  ;;  %v569_v36 = vrot.slane %v568_v33, 2 }
 0x6e0   : > { %v561_v37 = vadd.f32 %v560_v35, %v559_v32  ;;  %v570_v38 = vadd.f32 %v569_v36, %v568_v33 }
 0x6e2   : > { %v562_v39 = vrot.slane %v561_v37, 1  ;;  %v571_v40 = vrot.slane %v570_v38, 1 }
 0x6e4   : > { %v563_v41 = vadd.f32 %v562_v39, %v561_v37  ;;  %v572_v42 = vadd.f32 %v571_v40, %v570_v38 }
 0x763   : > { %v545_v15 = vpop.xlane.xlu0 %544  ;;  %v577_v46 = vpop.xlane.xlu1 %576 }
 0x764   : > { %v546_v19 = vrot.slane %v545_v15, 4 }
 0x766   : > { %v547_v21 = vadd.f32 %v546_v19, %v545_v15 }
 0x768   : > { %v548_v22 = vrot.slane %v547_v21, 2 }
 0x76a   : > { %v549_v23 = vadd.f32 %v548_v22, %v547_v21 }
 0x76c   : > { %v550_v24 = vrot.slane %v549_v23, 1 }
 0x76e   : > { %v551_v25 = vadd.f32 %v550_v24, %v549_v23 }
 0x770   : > { %862 = vpush %v551_v25 }
 0x7a1   : > { %s863_s24 = spop %862 }
 0x7a2   : > { %v553_v34 = vstv %s863_s24 }
 0x7a3   : > { %929 = vrcp.f32 %v553_v34 }
 0x7b0   : > { %v930_v43 = vpop.eup %929 }
 0x7b1   : > { %v564_v44 = vmul.f32 %v930_v43, %v563_v41  ;;  %v573_v45 = vmul.f32 %v930_v43, %v572_v42 }
 0x7b3   : > { %v578_v47 = vmul.f32 %v577_v46, %v564_v44  ;;  %v581_v48 = vmul.f32 %v577_v46, %v573_v45 }
 0x7b5   : > { %v579_v49 = vsub.f32 %v531_v8, %v578_v47  ;;  %v582_v50 = vsub.f32 %v534_v9, %v581_v48 }
 0x7b7   : > { %v580_v51 = vsel %vm535_vm8, %v564_v44, %v579_v49  ;;  %v583_v52 = vsel %vm535_vm8, %v573_v45, %v582_v50 }
 0x7b8   : > { %v614_v53 = vsel %vm585_vm10, %v580_v51, 0.0  ;;  %v591_v54 = vsel %vm590_vm12, %v580_v51, 0.0  ;;  %v605_v0 = vsel %vm584_vm11, %v583_v52, 0.0 }
 0x7b9   : > { %v615_v55 = vsel %vm248_vm5, %v614_v53, 0.0  ;;  %v592_v56 = vsel %vm248_vm5, %v591_v54, 0.0  ;;  %v606_v1 = vsel %vm248_vm5, %v605_v0, 0.0 }
 0x7ba   : > { %616 = vadd.xlane.f32.xlu1 %v615_v55  ;;  %593 = vadd.xlane.f32.xlu0 %v592_v56  ;;  %v607_v2 = vrot.slane %v606_v1, 4 }
 0x7bc   : > { %v608_v3 = vadd.f32 %v607_v2, %v606_v1 }
 0x7be   : > { %v609_v5 = vrot.slane %v608_v3, 2 }
 0x7c0   : > { %v610_v6 = vadd.f32 %v609_v5, %v608_v3 }
 0x7c2   : > { %v611_v7 = vrot.slane %v610_v6, 1 }
 0x7c4   : > { %v612_v8 = vadd.f32 %v611_v7, %v610_v6 }
 0x843   : > { %v594_v57 = vpop.xlane.xlu0 %593  ;;  %v617_v11 = vpop.xlane.xlu1 %616 }
 0x844   : > { %v595_v58 = vrot.slane %v594_v57, 4 }
 0x846   : > { %v596_v59 = vadd.f32 %v595_v58, %v594_v57 }
 0x848   : > { %v597_v60 = vrot.slane %v596_v59, 2 }
 0x84a   : > { %v598_v61 = vadd.f32 %v597_v60, %v596_v59 }
 0x84c   : > { %v599_v62 = vrot.slane %v598_v61, 1 }
 0x84e   : > { %v600_v63 = vadd.f32 %v599_v62, %v598_v61 }
 0x850   : > { %864 = vpush %v600_v63 }
 0x881   : > { %s865_s25 = spop %864 }
 0x882   : > { %v602_v4 = vstv %s865_s25 }
 0x883   : > { %931 = vrcp.f32 %v602_v4 }
 0x890   : > { %v932_v9 = vpop.eup %931 }
 0x891   : > { %v613_v10 = vmul.f32 %v932_v9, %v612_v8 }
 0x893   : > { %v618_v12 = vmul.f32 %v617_v11, %v613_v10 }
 0x895   : > { %v619_v13 = vsub.f32 %v583_v52, %v618_v12 }
 0x897   : > { %v620_v15 = vsel %vm584_vm11, %v613_v10, %v619_v13 }
 0x898   : > { %846 = vmatpush3.msra.mxu1 %v620_v15 }
 0x899   : > { %848 = vmatmul.mubr.msk.f32.vlgmr.msra.gmra.mxu1 %vm248_vm5, %v1118_v20 }
 0x959   : > { %v690_v19 = vpop.f32.mrf.mxu1 }
 0x95a   : > { %v694_v21 = vsel %vm248_vm5, %v690_v19, -inf  ;;  %v706_v31 = vmul.f32 %v1113_v18, %v690_v19 }
 0x95b   : > { %695 = vmax.xlane.f32.xlu0 %v694_v21  ;;  %v849_v22 = vpop.f32.mrf.mxu1 }
 0x95c   : > { %v707_v32 = vsel %vm248_vm5, %v706_v31, 0.0 }
 0x9e4   : > { %v696_v23 = vpop.xlane.xlu0 %695 }
 0x9e5   : > { %v697_v24 = vsub.f32 %v690_v19, %v696_v23  ;;  %vm724_vm14 = vcmp.ge.f32.partialorder %v690_v19, %v696_v23 }
 0x9e6   : > { %v725_v25 = vsel %vm724_vm14, %v1108_v17, 8 }
 0x9e7   : > { %v698_v26 = vmul.f32 1.442695, %v697_v24  ;;  %v726_v27 = vsel %vm248_vm5, %v725_v25, 2147483647 }
 0x9e8   : > { %v728_v28 = vshra.s32 %v726_v27, 16  ;;  %v727_v33 = vand.u32 65535, %v726_v27 }
 0x9e9   : > { %933 = vpow2.f32 %v698_v26 }
 0x9ea   : > { %v730_v29 = vcvt.s32.f32 %v728_v28  ;;  %v729_v35 = vcvt.s32.f32 %v727_v33 }
 0x9ec   : > { %731 = vmin.xlane.f32.xlu1 %v730_v29 }
 0x9f6   : > { %v934_v30 = vpop.eup %933 }
 0x9f7   : > { %v700_v20 = vsel %vm248_vm5, %v934_v30, 0.0 }
 0x9f8   : > { %701 = vadd.xlane.f32.xlu0 %v700_v20 }
 0x9fc   : > { %708 = vadd.xlane.f32.xlu0 %v707_v32 }
 0xa75   : > { %v732_v34 = vpop.xlane.xlu1 %731 }
 0xa76   : > { %vm733_vm15 = vcmp.eq.f32.partialorder %v730_v29, %v732_v34  ;;  %v738_v18 = vcvt.f32.s32 %v732_v34 }
 0xa77   : > { %v734_v36 = vsel %vm733_vm15, %v729_v35, inf }
 0xa78   : > { %735 = vmin.xlane.f32.xlu1 %v734_v36  ;;  %v739_v45 = vshll.u32 %v738_v18, 16 }
 0xa81   : > { %v702_v37 = vpop.xlane.xlu0 %701 }
 0xa82   : > { %935 = vlog2.f32 %v702_v37 }
 0xa85   : > { %v709_v41 = vpop.xlane.xlu0 %708 }
 0xa8f   : > { %v936_v38 = vpop.eup %935 }
 0xa90   : > { %v704_v39 = vmul.f32 0.6931472, %v936_v38 }
 0xa92   : > { %v705_v40 = vadd.f32 %v704_v39, %v696_v23 }
 0xa94   : > { %v710_v42 = vsub.f32 %v705_v40, %v709_v41 }
 0xa96   : > { %v712_v43 = vsel %vm711_vm0, %v710_v42, 0.0 }
 0xa97   : > { %713 = vadd.xlane.f32.xlu1 %v712_v43 }
 0xb01   : > { %v736_v44 = vpop.xlane.xlu1 %735 }
 0xb02   : > { %v737_v46 = vcvt.f32.s32 %v736_v44 }
 0xb04   : > { %v740_v47 = vadd.s32 %v739_v45, %v737_v46 }
 0xb06   : > { %vm741_vm5 = vcmp.eq.s32.totalorder %v740_v47, %v1106_v16 }
 0xb07   : > { %v831_v48 = vsel %vm741_vm5, 1.0, %v1004_v14 }
 0xb08   : > { %v744_v49 = vsel %vm711_vm0, %v831_v48, 0.0 }
 0xb09   : > { %745 = vadd.xlane.f32.xlu0 %v744_v49 }
 0xb20   : > { %v714_v50 = vpop.xlane.xlu1 %713 }
 0xb21   : > { %v715_v51 = vrot.slane %v714_v50, 4 }
 0xb23   : > { %v716_v52 = vadd.f32 %v715_v51, %v714_v50 }
 0xb25   : > { %v717_v53 = vrot.slane %v716_v52, 2 }
 0xb27   : > { %v718_v54 = vadd.f32 %v717_v53, %v716_v52 }
 0xb29   : > { %v719_v55 = vrot.slane %v718_v54, 1 }
 0xb2b   : > { %v720_v56 = vadd.f32 %v719_v55, %v718_v54 }
 0xb2d   : > { %866 = vpush %v720_v56 }
 0xb5e   : > { %s867_s26 = spop %866 }
 0xb5f   : > { %v722_v14 = vstv %s867_s26 }
 0xb60   : > { %v723_v0 = vmul.f32 0.125, %v722_v14 }
 0xb92   : > { %v746_v57 = vpop.xlane.xlu0 %745 }
 0xb93   : > { %v747_v58 = vrot.slane %v746_v57, 4 }
 0xb95   : > { %v748_v59 = vadd.f32 %v747_v58, %v746_v57 }
 0xb97   : > { %v749_v60 = vrot.slane %v748_v59, 2 }
 0xb99   : > { %v750_v61 = vadd.f32 %v749_v60, %v748_v59 }
 0xb9b   : > { %v751_v16 = vrot.slane %v750_v61, 1 }
 0xb9d   : > { %v752_v62 = vadd.f32 %v751_v16, %v750_v61 }
 0xb9f   : > { %868 = vpush %v752_v62 }
 0xbd0   : > { %s869_s27 = spop %868 }
 0xbd1   : > { %v754_v63 = vstv %s869_s27 }
 0xbd2   : > { %v755_v1 = vmul.f32 0.125, %v754_v63 }
 0xbd4   : > { %v756_v2 = vsel %vm241_vm3, %v723_v0, %v755_v1 }
 0xbd5   : > { %758 = vst.msk [vmem:[%s132_s30] sm:$0x1] %vm757_vm1, %v756_v2 }
 0xbd6 PF: > { %p11_p9 = scmp.ge.s32.totalorder %s1038_s11, 6   ;;  %s1285_s6 = smov %s991_s7 }
 0xbd7   : > { %s1286_s7 = smov %s995_s8  ;;  %s1287_s8 = smov %s1048_s14 }
 0xbd8   : > { %s1288_s9 = smov %s1038_s11  ;;  %13 = sbr.rel (!%p11_p9) target bundleno = 3 (0x3), region = 64 }
 0xbdd   :  { %776 = vsyncpa [#allocation3], 1 }
 0xbde   :  { %778 = vsyncpa [#allocation3 + $0x1], 1 }

</bundles_post_ra>
